<compile_context>
chip_gen: v7x
topology: tpu7x:2x2x1
jax: 0.10.0
libtpu: 0.0.40
codegen_flags: <defaults>
</compile_context>

<pallas_src>
import jax
import jax.numpy as jnp
from jax.experimental import pallas as pl
from jax.experimental.pallas import tpu as pltpu


def _make_cbam_kernel(C, H, W, HWp, ks):
    HW = H * W                      # true (unpadded) pixel count
    pad = ks // 2
    inv_hw = 1.0 / float(HW)
    inv_c = 1.0 / float(C)

    def kernel(x_ref, wfc_ref, bfc_ref, wsa_ref, o_ref):
        # x_ref: (C, HWp) VMEM; wfc_ref: (C, C) VMEM; bfc_ref: (C, 1) VMEM
        # wsa_ref: (2, ks*ks) SMEM scalar weights
        x = x_ref[...].astype(jnp.float32)                        # (C, HWp)

        # ---------------- channel attention ----------------
        # padded tail columns are zero, so the sum over HWp equals the sum
        # over the true HW; divide by the true HW.
        pooled = jnp.sum(x, axis=1, keepdims=True) * inv_hw        # (C, 1)
        logits = jnp.dot(wfc_ref[...], pooled,
                         preferred_element_type=jnp.float32)       # (C, 1)
        ca = jax.nn.sigmoid(logits + bfc_ref[...])                 # (C, 1)
        y = x * ca                                                 # (C, HWp)

        # ---------------- spatial attention ----------------
        mean_c = jnp.sum(y, axis=0, keepdims=True) * inv_c         # (1, HWp)
        max_c = jnp.max(y, axis=0, keepdims=True)                  # (1, HWp)

        # flattened pixel index and column coordinate for boundary masking
        pos = jax.lax.broadcasted_iota(jnp.int32, (1, HWp), 1)
        col = pos % W

        # 7 column-shifted, column-masked copies of each map, built once.
        # shifted[p] = map[(p + dj) mod HWp]; wrapped / cross-row positions
        # are exactly the ones killed by the column mask.
        mean_sh = []
        max_sh = []
        for dj in range(-pad, pad + 1):
            if dj == 0:
                mean_sh.append(mean_c)
                max_sh.append(max_c)
                continue
            s = (-dj) % HWp
            cvalid = (col + dj >= 0) & (col + dj < W)
            mean_sh.append(
                jnp.where(cvalid, pltpu.roll(mean_c, shift=s, axis=1), 0.0))
            max_sh.append(
                jnp.where(cvalid, pltpu.roll(max_c, shift=s, axis=1), 0.0))

        # For each row offset di: weighted sum of the 7 precomputed column
        # shifts (both maps), then ONE row roll + ONE row mask.
        acc = jnp.zeros((1, HWp), jnp.float32)
        for di in range(-pad, pad + 1):
            s_di = jnp.zeros((1, HWp), jnp.float32)
            for dj in range(-pad, pad + 1):
                ti = (di + pad) * ks + (dj + pad)
                s_di = (s_di
                        + wsa_ref[0, ti] * mean_sh[dj + pad]
                        + wsa_ref[1, ti] * max_sh[dj + pad])
            if di != 0:
                delta = di * W
                s_di = pltpu.roll(s_di, shift=(-delta) % HWp, axis=1)
                # source row valid  <=>  0 <= p + di*W < HW (true HW)
                rvalid = (pos + delta >= 0) & (pos + delta < HW)
                s_di = jnp.where(rvalid, s_di, 0.0)
            acc = acc + s_di

        sa = jax.nn.sigmoid(acc)                                   # (1, HWp)
        o_ref[...] = (y * sa).astype(o_ref.dtype)                  # (C, HWp)

    return kernel


def cbam_forward(x, wfc, bfc, wsa, kernel_size=7):
    """x: (N, C, H, W). wfc: (C, C, 1, 1) or (C, C). bfc: (C,).
    wsa: (1, 2, k, k) spatial-attention conv weight (bias-free)."""
    N, C, H, W = x.shape
    HW = H * W
    ks = kernel_size
    assert wsa.size == 2 * ks * ks, "spatial-attention weight shape mismatch"

    # lane-dense layout: pad the flattened spatial dim to a multiple of 128
    # so stores are full-rate (no masked partial vst).
    HWp = ((HW + 127) // 128) * 128

    x2 = x.reshape(N, C, HW)
    if HWp != HW:
        x2 = jnp.pad(x2, ((0, 0), (0, 0), (0, HWp - HW)))
    wfc2 = wfc.reshape(C, C).astype(jnp.float32)
    bfc2 = bfc.reshape(C, 1).astype(jnp.float32)
    wsa2 = wsa.reshape(2, ks * ks).astype(jnp.float32)

    kernel = _make_cbam_kernel(C, H, W, HWp, ks)

    # --- VMEM budget from the actual working set (v7x: only 64 MiB/TC) ---
    io_block = C * HWp * x.dtype.itemsize           # one (C, HWp) I/O block
    f32_work = (2 * C * HWp + 32 * HWp) * 4         # x_f32, y, maps/acc/masks
    w_bytes = (C * C + C) * 4
    need = 2 * io_block * 2 + 2 * w_bytes + f32_work   # double-buffered I/O
    vmem_limit = int(min(56 * 1024 * 1024,
                         max(8 * 1024 * 1024, int(need * 1.5))))

    flops = int(N * (5 * C * HW + 4 * ks * ks * HW + 2 * C * C))
    transcendentals = int(N * (C + HW))
    bytes_accessed = int(2 * N * C * HWp * x.dtype.itemsize
                         + (C * C + C + 2 * ks * ks) * 4)

    out = pl.pallas_call(
        kernel,
        out_shape=jax.ShapeDtypeStruct((N, C, HWp), x.dtype),
        grid_spec=pltpu.PrefetchScalarGridSpec(
            num_scalar_prefetch=0,
            grid=(N,),
            in_specs=[
                # one whole image per grid step, lane-dense (C, HWp)
                pl.BlockSpec((None, C, HWp), lambda n: (n, 0, 0)),
                # small weights: resident in VMEM (constant block index)
                pl.BlockSpec((C, C), lambda n: (0, 0)),
                pl.BlockSpec((C, 1), lambda n: (0, 0)),
                # 7x7 conv weights as SMEM scalars
                pl.BlockSpec(memory_space=pltpu.MemorySpace.SMEM),
            ],
            out_specs=pl.BlockSpec((None, C, HWp), lambda n: (n, 0, 0)),
        ),
        compiler_params=pltpu.CompilerParams(
            dimension_semantics=("parallel",),
            vmem_limit_bytes=vmem_limit,
        ),
        cost_estimate=pl.CostEstimate(
            flops=flops,
            transcendentals=transcendentals,
            bytes_accessed=bytes_accessed,
        ),
    )(x2, wfc2, bfc2, wsa2)

    if HWp != HW:
        out = out[..., :HW]
    return out.reshape(N, C, H, W)


def _reference(x, wfc, bfc, wsa):
    """Pure-JAX reference matching the PyTorch CBAM forward."""
    N, C, H, W = x.shape
    # channel attention
    pooled = jnp.mean(x, axis=(2, 3))                              # (N, C)
    ca = jax.nn.sigmoid(pooled @ wfc.reshape(C, C).T + bfc.reshape(C))
    y = x * ca[:, :, None, None]
    # spatial attention
    mean_c = jnp.mean(y, axis=1, keepdims=True)
    max_c = jnp.max(y, axis=1, keepdims=True)
    m = jnp.concatenate([mean_c, max_c], axis=1)                   # (N,2,H,W)
    w4 = wsa.reshape(1, 2, wsa.shape[-2], wsa.shape[-1])
    p = w4.shape[-1] // 2
    dn = jax.lax.conv_dimension_numbers(m.shape, w4.shape, ("NCHW", "OIHW", "NCHW"))
    s = jax.lax.conv_general_dilated(m, w4, (1, 1), ((p, p), (p, p)),
                                     dimension_numbers=dn)
    sa = jax.nn.sigmoid(s)
    return y * sa


if __name__ == "__main__":
    key = jax.random.PRNGKey(0)
    k_x, k_wfc, k_bfc, k_wsa = jax.random.split(key, 4)

    N, C, H, W = 2, 4, 16, 16
    ks = 7

    x = jax.random.normal(k_x, (N, C, H, W), jnp.float32)
    wfc = jax.random.normal(k_wfc, (C, C, 1, 1), jnp.float32) * 0.3   # fc weight
    bfc = jax.random.normal(k_bfc, (C,), jnp.float32) * 0.1           # fc bias
    wsa = jax.random.normal(k_wsa, (1, 2, ks, ks), jnp.float32) * 0.2 # cv1 weight

    out = cbam_forward(x, wfc, bfc, wsa, kernel_size=ks)
    out = jax.block_until_ready(out)

    ref = _reference(x, wfc, bfc, wsa)
    assert out.shape == (N, C, H, W)
    assert jnp.allclose(out, ref, atol=1e-4, rtol=1e-4), "mismatch vs reference"

    print("KERNEL_OK")
</pallas_src>

<mosaic_0001>
module attributes {stable_mosaic.version = 11 : i64} {
  func.func @kernel(%arg0: i32, %arg1: memref<1x4x256xf32, #tpu.memory_space<vmem>>, %arg2: memref<4x4xf32, #tpu.memory_space<vmem>>, %arg3: memref<4x1xf32, #tpu.memory_space<vmem>>, %arg4: memref<2x49xf32, #tpu.memory_space<smem>>, %arg5: memref<1x4x256xf32, #tpu.memory_space<vmem>>) attributes {dimension_semantics = [#tpu.dimension_semantics<parallel>], iteration_bounds = array<i64: 2>, scalar_prefetch = 0 : i64, scratch_operands = 0 : i64, tpu.core_type = #tpu.core_type<tc>, window_params = [{transform_indices = @transform_0, window_bounds = array<i64: 1, 4, 256>}, {pipeline_mode = #tpu.pipeline_mode<synchronous>, transform_indices = @transform_1, window_bounds = array<i64: 4, 4>}, {pipeline_mode = #tpu.pipeline_mode<synchronous>, transform_indices = @transform_2, window_bounds = array<i64: 4, 1>}, {transform_indices = @transform_3, window_bounds = array<i64: 2, 49>}, {transform_indices = @transform_4, window_bounds = array<i64: 1, 4, 256>}]} {
    %c0 = arith.constant 0 : index
    %c0_0 = arith.constant 0 : index
    %c0_1 = arith.constant 0 : index
    %0 = vector.load %arg1[%c0, %c0_0, %c0_1] : memref<1x4x256xf32, #tpu.memory_space<vmem>>, vector<1x4x256xf32>
    %1 = vector.shape_cast %0 : vector<1x4x256xf32> to vector<4x256xf32>
    %cst = arith.constant dense<0.000000e+00> : vector<4xf32>
    %2 = vector.multi_reduction <add>, %1, %cst [1] : vector<4x256xf32> to vector<4xf32>
    %3 = vector.shape_cast %2 : vector<4xf32> to vector<4x1xf32>
    %cst_2 = arith.constant 3.906250e-03 : f32
    %4 = vector.broadcast %cst_2 : f32 to vector<4x1xf32>
    %5 = arith.mulf %3, %4 : vector<4x1xf32>
    %c0_3 = arith.constant 0 : index
    %c0_4 = arith.constant 0 : index
    %6 = vector.load %arg2[%c0_3, %c0_4] : memref<4x4xf32, #tpu.memory_space<vmem>>, vector<4x4xf32>
    %cst_5 = arith.constant dense<0.000000e+00> : vector<4x1xf32>
    %7 = tpu.matmul %6, %5, %cst_5 {dimension_numbers = #tpu.dot_dimension_numbers<[1], [0], [0], [1], [0, 0, 1, 1], [], []>} : vector<4x4xf32>, vector<4x1xf32>, vector<4x1xf32> -> vector<4x1xf32>
    %c0_6 = arith.constant 0 : index
    %c0_7 = arith.constant 0 : index
    %8 = vector.load %arg3[%c0_6, %c0_7] : memref<4x1xf32, #tpu.memory_space<vmem>>, vector<4x1xf32>
    %9 = arith.addf %7, %8 : vector<4x1xf32>
    %10 = arith.negf %9 : vector<4x1xf32>
    %11 = math.exp %10 : vector<4x1xf32>
    %cst_8 = arith.constant 1.000000e+00 : f32
    %12 = vector.broadcast %cst_8 : f32 to vector<4x1xf32>
    %13 = arith.addf %12, %11 : vector<4x1xf32>
    %14 = arith.divf %12, %13 : vector<4x1xf32>
    %15 = vector.broadcast %14 : vector<4x1xf32> to vector<4x256xf32>
    %16 = arith.mulf %1, %15 : vector<4x256xf32>
    %cst_9 = arith.constant dense<0.000000e+00> : vector<256xf32>
    %17 = vector.multi_reduction <add>, %16, %cst_9 [0] : vector<4x256xf32> to vector<256xf32>
    %18 = vector.shape_cast %17 : vector<256xf32> to vector<1x256xf32>
    %cst_10 = arith.constant 2.500000e-01 : f32
    %19 = vector.broadcast %cst_10 : f32 to vector<1x256xf32>
    %20 = arith.mulf %18, %19 : vector<1x256xf32>
    %cst_11 = arith.constant dense<0xFF800000> : vector<256xf32>
    %21 = vector.multi_reduction <maximumf>, %16, %cst_11 [0] : vector<4x256xf32> to vector<256xf32>
    %22 = vector.shape_cast %21 : vector<256xf32> to vector<1x256xf32>
    %23 = tpu.iota {dimensions = array<i32: 1>} : vector<1x256xi32>
    %c16_i32 = arith.constant 16 : i32
    %c0_i32 = arith.constant 0 : i32
    %24 = arith.cmpi eq, %c16_i32, %c0_i32 : i32
    %c1_i32 = arith.constant 1 : i32
    %25 = arith.select %24, %c1_i32, %c16_i32 : i32
    %26 = vector.broadcast %25 : i32 to vector<1x256xi32>
    %27 = arith.remsi %23, %26 : vector<1x256xi32>
    %c0_i32_12 = arith.constant 0 : i32
    %28 = vector.broadcast %c0_i32_12 : i32 to vector<1x256xi32>
    %29 = arith.cmpi ne, %27, %28 : vector<1x256xi32>
    %c0_i32_13 = arith.constant 0 : i32
    %30 = vector.broadcast %c0_i32_13 : i32 to vector<1x256xi32>
    %31 = arith.cmpi slt, %27, %30 : vector<1x256xi32>
    %c0_i32_14 = arith.constant 0 : i32
    %32 = arith.cmpi slt, %25, %c0_i32_14 : i32
    %33 = vector.broadcast %32 : i1 to vector<1x256xi1>
    %34 = vector.broadcast %33 : vector<1x256xi1> to vector<1x256xi1>
    %35 = arith.xori %31, %34 : vector<1x256xi1>
    %36 = arith.andi %35, %29 : vector<1x256xi1>
    %37 = vector.broadcast %25 : i32 to vector<1x256xi32>
    %38 = arith.addi %27, %37 : vector<1x256xi32>
    %39 = arith.select %36, %38, %27 : vector<1x256xi1>, vector<1x256xi32>
    %c-3_i32 = arith.constant -3 : i32
    %40 = vector.broadcast %c-3_i32 : i32 to vector<1x256xi32>
    %41 = arith.addi %39, %40 : vector<1x256xi32>
    %c0_i32_15 = arith.constant 0 : i32
    %42 = vector.broadcast %c0_i32_15 : i32 to vector<1x256xi32>
    %43 = arith.cmpi sge, %41, %42 : vector<1x256xi32>
    %c-3_i32_16 = arith.constant -3 : i32
    %44 = vector.broadcast %c-3_i32_16 : i32 to vector<1x256xi32>
    %45 = arith.addi %39, %44 : vector<1x256xi32>
    %c16_i32_17 = arith.constant 16 : i32
    %46 = vector.broadcast %c16_i32_17 : i32 to vector<1x256xi32>
    %47 = arith.cmpi slt, %45, %46 : vector<1x256xi32>
    %48 = arith.andi %43, %47 : vector<1x256xi1>
    %c3_i32 = arith.constant 3 : i32
    %49 = tpu.dynamic_rotate %20 by %c3_i32 dim 1 : vector<1x256xf32>, i32 -> vector<1x256xf32>
    %cst_18 = arith.constant 0.000000e+00 : f32
    %50 = vector.broadcast %cst_18 : f32 to vector<1x256xf32>
    %51 = arith.select %48, %49, %50 : vector<1x256xi1>, vector<1x256xf32>
    %c3_i32_19 = arith.constant 3 : i32
    %52 = tpu.dynamic_rotate %22 by %c3_i32_19 dim 1 : vector<1x256xf32>, i32 -> vector<1x256xf32>
    %cst_20 = arith.constant 0.000000e+00 : f32
    %53 = vector.broadcast %cst_20 : f32 to vector<1x256xf32>
    %54 = arith.select %48, %52, %53 : vector<1x256xi1>, vector<1x256xf32>
    %c-2_i32 = arith.constant -2 : i32
    %55 = vector.broadcast %c-2_i32 : i32 to vector<1x256xi32>
    %56 = arith.addi %39, %55 : vector<1x256xi32>
    %c0_i32_21 = arith.constant 0 : i32
    %57 = vector.broadcast %c0_i32_21 : i32 to vector<1x256xi32>
    %58 = arith.cmpi sge, %56, %57 : vector<1x256xi32>
    %c-2_i32_22 = arith.constant -2 : i32
    %59 = vector.broadcast %c-2_i32_22 : i32 to vector<1x256xi32>
    %60 = arith.addi %39, %59 : vector<1x256xi32>
    %c16_i32_23 = arith.constant 16 : i32
    %61 = vector.broadcast %c16_i32_23 : i32 to vector<1x256xi32>
    %62 = arith.cmpi slt, %60, %61 : vector<1x256xi32>
    %63 = arith.andi %58, %62 : vector<1x256xi1>
    %c2_i32 = arith.constant 2 : i32
    %64 = tpu.dynamic_rotate %20 by %c2_i32 dim 1 : vector<1x256xf32>, i32 -> vector<1x256xf32>
    %cst_24 = arith.constant 0.000000e+00 : f32
    %65 = vector.broadcast %cst_24 : f32 to vector<1x256xf32>
    %66 = arith.select %63, %64, %65 : vector<1x256xi1>, vector<1x256xf32>
    %c2_i32_25 = arith.constant 2 : i32
    %67 = tpu.dynamic_rotate %22 by %c2_i32_25 dim 1 : vector<1x256xf32>, i32 -> vector<1x256xf32>
    %cst_26 = arith.constant 0.000000e+00 : f32
    %68 = vector.broadcast %cst_26 : f32 to vector<1x256xf32>
    %69 = arith.select %63, %67, %68 : vector<1x256xi1>, vector<1x256xf32>
    %c-1_i32 = arith.constant -1 : i32
    %70 = vector.broadcast %c-1_i32 : i32 to vector<1x256xi32>
    %71 = arith.addi %39, %70 : vector<1x256xi32>
    %c0_i32_27 = arith.constant 0 : i32
    %72 = vector.broadcast %c0_i32_27 : i32 to vector<1x256xi32>
    %73 = arith.cmpi sge, %71, %72 : vector<1x256xi32>
    %c-1_i32_28 = arith.constant -1 : i32
    %74 = vector.broadcast %c-1_i32_28 : i32 to vector<1x256xi32>
    %75 = arith.addi %39, %74 : vector<1x256xi32>
    %c16_i32_29 = arith.constant 16 : i32
    %76 = vector.broadcast %c16_i32_29 : i32 to vector<1x256xi32>
    %77 = arith.cmpi slt, %75, %76 : vector<1x256xi32>
    %78 = arith.andi %73, %77 : vector<1x256xi1>
    %c1_i32_30 = arith.constant 1 : i32
    %79 = tpu.dynamic_rotate %20 by %c1_i32_30 dim 1 : vector<1x256xf32>, i32 -> vector<1x256xf32>
    %cst_31 = arith.constant 0.000000e+00 : f32
    %80 = vector.broadcast %cst_31 : f32 to vector<1x256xf32>
    %81 = arith.select %78, %79, %80 : vector<1x256xi1>, vector<1x256xf32>
    %c1_i32_32 = arith.constant 1 : i32
    %82 = tpu.dynamic_rotate %22 by %c1_i32_32 dim 1 : vector<1x256xf32>, i32 -> vector<1x256xf32>
    %cst_33 = arith.constant 0.000000e+00 : f32
    %83 = vector.broadcast %cst_33 : f32 to vector<1x256xf32>
    %84 = arith.select %78, %82, %83 : vector<1x256xi1>, vector<1x256xf32>
    %c1_i32_34 = arith.constant 1 : i32
    %85 = vector.broadcast %c1_i32_34 : i32 to vector<1x256xi32>
    %86 = arith.addi %39, %85 : vector<1x256xi32>
    %c0_i32_35 = arith.constant 0 : i32
    %87 = vector.broadcast %c0_i32_35 : i32 to vector<1x256xi32>
    %88 = arith.cmpi sge, %86, %87 : vector<1x256xi32>
    %c1_i32_36 = arith.constant 1 : i32
    %89 = vector.broadcast %c1_i32_36 : i32 to vector<1x256xi32>
    %90 = arith.addi %39, %89 : vector<1x256xi32>
    %c16_i32_37 = arith.constant 16 : i32
    %91 = vector.broadcast %c16_i32_37 : i32 to vector<1x256xi32>
    %92 = arith.cmpi slt, %90, %91 : vector<1x256xi32>
    %93 = arith.andi %88, %92 : vector<1x256xi1>
    %c255_i32 = arith.constant 255 : i32
    %94 = tpu.dynamic_rotate %20 by %c255_i32 dim 1 : vector<1x256xf32>, i32 -> vector<1x256xf32>
    %cst_38 = arith.constant 0.000000e+00 : f32
    %95 = vector.broadcast %cst_38 : f32 to vector<1x256xf32>
    %96 = arith.select %93, %94, %95 : vector<1x256xi1>, vector<1x256xf32>
    %c255_i32_39 = arith.constant 255 : i32
    %97 = tpu.dynamic_rotate %22 by %c255_i32_39 dim 1 : vector<1x256xf32>, i32 -> vector<1x256xf32>
    %cst_40 = arith.constant 0.000000e+00 : f32
    %98 = vector.broadcast %cst_40 : f32 to vector<1x256xf32>
    %99 = arith.select %93, %97, %98 : vector<1x256xi1>, vector<1x256xf32>
    %c2_i32_41 = arith.constant 2 : i32
    %100 = vector.broadcast %c2_i32_41 : i32 to vector<1x256xi32>
    %101 = arith.addi %39, %100 : vector<1x256xi32>
    %c0_i32_42 = arith.constant 0 : i32
    %102 = vector.broadcast %c0_i32_42 : i32 to vector<1x256xi32>
    %103 = arith.cmpi sge, %101, %102 : vector<1x256xi32>
    %c2_i32_43 = arith.constant 2 : i32
    %104 = vector.broadcast %c2_i32_43 : i32 to vector<1x256xi32>
    %105 = arith.addi %39, %104 : vector<1x256xi32>
    %c16_i32_44 = arith.constant 16 : i32
    %106 = vector.broadcast %c16_i32_44 : i32 to vector<1x256xi32>
    %107 = arith.cmpi slt, %105, %106 : vector<1x256xi32>
    %108 = arith.andi %103, %107 : vector<1x256xi1>
    %c254_i32 = arith.constant 254 : i32
    %109 = tpu.dynamic_rotate %20 by %c254_i32 dim 1 : vector<1x256xf32>, i32 -> vector<1x256xf32>
    %cst_45 = arith.constant 0.000000e+00 : f32
    %110 = vector.broadcast %cst_45 : f32 to vector<1x256xf32>
    %111 = arith.select %108, %109, %110 : vector<1x256xi1>, vector<1x256xf32>
    %c254_i32_46 = arith.constant 254 : i32
    %112 = tpu.dynamic_rotate %22 by %c254_i32_46 dim 1 : vector<1x256xf32>, i32 -> vector<1x256xf32>
    %cst_47 = arith.constant 0.000000e+00 : f32
    %113 = vector.broadcast %cst_47 : f32 to vector<1x256xf32>
    %114 = arith.select %108, %112, %113 : vector<1x256xi1>, vector<1x256xf32>
    %c3_i32_48 = arith.constant 3 : i32
    %115 = vector.broadcast %c3_i32_48 : i32 to vector<1x256xi32>
    %116 = arith.addi %39, %115 : vector<1x256xi32>
    %c0_i32_49 = arith.constant 0 : i32
    %117 = vector.broadcast %c0_i32_49 : i32 to vector<1x256xi32>
    %118 = arith.cmpi sge, %116, %117 : vector<1x256xi32>
    %c3_i32_50 = arith.constant 3 : i32
    %119 = vector.broadcast %c3_i32_50 : i32 to vector<1x256xi32>
    %120 = arith.addi %39, %119 : vector<1x256xi32>
    %c16_i32_51 = arith.constant 16 : i32
    %121 = vector.broadcast %c16_i32_51 : i32 to vector<1x256xi32>
    %122 = arith.cmpi slt, %120, %121 : vector<1x256xi32>
    %123 = arith.andi %118, %122 : vector<1x256xi1>
    %c253_i32 = arith.constant 253 : i32
    %124 = tpu.dynamic_rotate %20 by %c253_i32 dim 1 : vector<1x256xf32>, i32 -> vector<1x256xf32>
    %cst_52 = arith.constant 0.000000e+00 : f32
    %125 = vector.broadcast %cst_52 : f32 to vector<1x256xf32>
    %126 = arith.select %123, %124, %125 : vector<1x256xi1>, vector<1x256xf32>
    %c253_i32_53 = arith.constant 253 : i32
    %127 = tpu.dynamic_rotate %22 by %c253_i32_53 dim 1 : vector<1x256xf32>, i32 -> vector<1x256xf32>
    %cst_54 = arith.constant 0.000000e+00 : f32
    %128 = vector.broadcast %cst_54 : f32 to vector<1x256xf32>
    %129 = arith.select %123, %127, %128 : vector<1x256xi1>, vector<1x256xf32>
    %cst_55 = arith.constant 0.000000e+00 : f32
    %130 = vector.broadcast %cst_55 : f32 to vector<1x256xf32>
    %cst_56 = arith.constant 0.000000e+00 : f32
    %131 = vector.broadcast %cst_56 : f32 to vector<1x256xf32>
    %c0_57 = arith.constant 0 : index
    %c0_58 = arith.constant 0 : index
    %132 = memref.load %arg4[%c0_57, %c0_58] : memref<2x49xf32, #tpu.memory_space<smem>>
    %133 = vector.broadcast %132 : f32 to vector<1x256xf32>
    %134 = arith.mulf %133, %51 : vector<1x256xf32>
    %135 = arith.addf %131, %134 : vector<1x256xf32>
    %c1 = arith.constant 1 : index
    %c0_59 = arith.constant 0 : index
    %136 = memref.load %arg4[%c1, %c0_59] : memref<2x49xf32, #tpu.memory_space<smem>>
    %137 = vector.broadcast %136 : f32 to vector<1x256xf32>
    %138 = arith.mulf %137, %54 : vector<1x256xf32>
    %139 = arith.addf %135, %138 : vector<1x256xf32>
    %c0_60 = arith.constant 0 : index
    %c1_61 = arith.constant 1 : index
    %140 = memref.load %arg4[%c0_60, %c1_61] : memref<2x49xf32, #tpu.memory_space<smem>>
    %141 = vector.broadcast %140 : f32 to vector<1x256xf32>
    %142 = arith.mulf %141, %66 : vector<1x256xf32>
    %143 = arith.addf %139, %142 : vector<1x256xf32>
    %c1_62 = arith.constant 1 : index
    %c1_63 = arith.constant 1 : index
    %144 = memref.load %arg4[%c1_62, %c1_63] : memref<2x49xf32, #tpu.memory_space<smem>>
    %145 = vector.broadcast %144 : f32 to vector<1x256xf32>
    %146 = arith.mulf %145, %69 : vector<1x256xf32>
    %147 = arith.addf %143, %146 : vector<1x256xf32>
    %c0_64 = arith.constant 0 : index
    %c2 = arith.constant 2 : index
    %148 = memref.load %arg4[%c0_64, %c2] : memref<2x49xf32, #tpu.memory_space<smem>>
    %149 = vector.broadcast %148 : f32 to vector<1x256xf32>
    %150 = arith.mulf %149, %81 : vector<1x256xf32>
    %151 = arith.addf %147, %150 : vector<1x256xf32>
    %c1_65 = arith.constant 1 : index
    %c2_66 = arith.constant 2 : index
    %152 = memref.load %arg4[%c1_65, %c2_66] : memref<2x49xf32, #tpu.memory_space<smem>>
    %153 = vector.broadcast %152 : f32 to vector<1x256xf32>
    %154 = arith.mulf %153, %84 : vector<1x256xf32>
    %155 = arith.addf %151, %154 : vector<1x256xf32>
    %c0_67 = arith.constant 0 : index
    %c3 = arith.constant 3 : index
    %156 = memref.load %arg4[%c0_67, %c3] : memref<2x49xf32, #tpu.memory_space<smem>>
    %157 = vector.broadcast %156 : f32 to vector<1x256xf32>
    %158 = arith.mulf %157, %20 : vector<1x256xf32>
    %159 = arith.addf %155, %158 : vector<1x256xf32>
    %c1_68 = arith.constant 1 : index
    %c3_69 = arith.constant 3 : index
    %160 = memref.load %arg4[%c1_68, %c3_69] : memref<2x49xf32, #tpu.memory_space<smem>>
    %161 = vector.broadcast %160 : f32 to vector<1x256xf32>
    %162 = arith.mulf %161, %22 : vector<1x256xf32>
    %163 = arith.addf %159, %162 : vector<1x256xf32>
    %c0_70 = arith.constant 0 : index
    %c4 = arith.constant 4 : index
    %164 = memref.load %arg4[%c0_70, %c4] : memref<2x49xf32, #tpu.memory_space<smem>>
    %165 = vector.broadcast %164 : f32 to vector<1x256xf32>
    %166 = arith.mulf %165, %96 : vector<1x256xf32>
    %167 = arith.addf %163, %166 : vector<1x256xf32>
    %c1_71 = arith.constant 1 : index
    %c4_72 = arith.constant 4 : index
    %168 = memref.load %arg4[%c1_71, %c4_72] : memref<2x49xf32, #tpu.memory_space<smem>>
    %169 = vector.broadcast %168 : f32 to vector<1x256xf32>
    %170 = arith.mulf %169, %99 : vector<1x256xf32>
    %171 = arith.addf %167, %170 : vector<1x256xf32>
    %c0_73 = arith.constant 0 : index
    %c5 = arith.constant 5 : index
    %172 = memref.load %arg4[%c0_73, %c5] : memref<2x49xf32, #tpu.memory_space<smem>>
    %173 = vector.broadcast %172 : f32 to vector<1x256xf32>
    %174 = arith.mulf %173, %111 : vector<1x256xf32>
    %175 = arith.addf %171, %174 : vector<1x256xf32>
    %c1_74 = arith.constant 1 : index
    %c5_75 = arith.constant 5 : index
    %176 = memref.load %arg4[%c1_74, %c5_75] : memref<2x49xf32, #tpu.memory_space<smem>>
    %177 = vector.broadcast %176 : f32 to vector<1x256xf32>
    %178 = arith.mulf %177, %114 : vector<1x256xf32>
    %179 = arith.addf %175, %178 : vector<1x256xf32>
    %c0_76 = arith.constant 0 : index
    %c6 = arith.constant 6 : index
    %180 = memref.load %arg4[%c0_76, %c6] : memref<2x49xf32, #tpu.memory_space<smem>>
    %181 = vector.broadcast %180 : f32 to vector<1x256xf32>
    %182 = arith.mulf %181, %126 : vector<1x256xf32>
    %183 = arith.addf %179, %182 : vector<1x256xf32>
    %c1_77 = arith.constant 1 : index
    %c6_78 = arith.constant 6 : index
    %184 = memref.load %arg4[%c1_77, %c6_78] : memref<2x49xf32, #tpu.memory_space<smem>>
    %185 = vector.broadcast %184 : f32 to vector<1x256xf32>
    %186 = arith.mulf %185, %129 : vector<1x256xf32>
    %187 = arith.addf %183, %186 : vector<1x256xf32>
    %c48_i32 = arith.constant 48 : i32
    %188 = tpu.dynamic_rotate %187 by %c48_i32 dim 1 : vector<1x256xf32>, i32 -> vector<1x256xf32>
    %c-48_i32 = arith.constant -48 : i32
    %189 = vector.broadcast %c-48_i32 : i32 to vector<1x256xi32>
    %190 = arith.addi %23, %189 : vector<1x256xi32>
    %c0_i32_79 = arith.constant 0 : i32
    %191 = vector.broadcast %c0_i32_79 : i32 to vector<1x256xi32>
    %192 = arith.cmpi sge, %190, %191 : vector<1x256xi32>
    %c-48_i32_80 = arith.constant -48 : i32
    %193 = vector.broadcast %c-48_i32_80 : i32 to vector<1x256xi32>
    %194 = arith.addi %23, %193 : vector<1x256xi32>
    %c256_i32 = arith.constant 256 : i32
    %195 = vector.broadcast %c256_i32 : i32 to vector<1x256xi32>
    %196 = arith.cmpi slt, %194, %195 : vector<1x256xi32>
    %197 = arith.andi %192, %196 : vector<1x256xi1>
    %cst_81 = arith.constant 0.000000e+00 : f32
    %198 = vector.broadcast %cst_81 : f32 to vector<1x256xf32>
    %199 = arith.select %197, %188, %198 : vector<1x256xi1>, vector<1x256xf32>
    %200 = arith.addf %130, %199 : vector<1x256xf32>
    %cst_82 = arith.constant 0.000000e+00 : f32
    %201 = vector.broadcast %cst_82 : f32 to vector<1x256xf32>
    %c0_83 = arith.constant 0 : index
    %c7 = arith.constant 7 : index
    %202 = memref.load %arg4[%c0_83, %c7] : memref<2x49xf32, #tpu.memory_space<smem>>
    %203 = vector.broadcast %202 : f32 to vector<1x256xf32>
    %204 = arith.mulf %203, %51 : vector<1x256xf32>
    %205 = arith.addf %201, %204 : vector<1x256xf32>
    %c1_84 = arith.constant 1 : index
    %c7_85 = arith.constant 7 : index
    %206 = memref.load %arg4[%c1_84, %c7_85] : memref<2x49xf32, #tpu.memory_space<smem>>
    %207 = vector.broadcast %206 : f32 to vector<1x256xf32>
    %208 = arith.mulf %207, %54 : vector<1x256xf32>
    %209 = arith.addf %205, %208 : vector<1x256xf32>
    %c0_86 = arith.constant 0 : index
    %c8 = arith.constant 8 : index
    %210 = memref.load %arg4[%c0_86, %c8] : memref<2x49xf32, #tpu.memory_space<smem>>
    %211 = vector.broadcast %210 : f32 to vector<1x256xf32>
    %212 = arith.mulf %211, %66 : vector<1x256xf32>
    %213 = arith.addf %209, %212 : vector<1x256xf32>
    %c1_87 = arith.constant 1 : index
    %c8_88 = arith.constant 8 : index
    %214 = memref.load %arg4[%c1_87, %c8_88] : memref<2x49xf32, #tpu.memory_space<smem>>
    %215 = vector.broadcast %214 : f32 to vector<1x256xf32>
    %216 = arith.mulf %215, %69 : vector<1x256xf32>
    %217 = arith.addf %213, %216 : vector<1x256xf32>
    %c0_89 = arith.constant 0 : index
    %c9 = arith.constant 9 : index
    %218 = memref.load %arg4[%c0_89, %c9] : memref<2x49xf32, #tpu.memory_space<smem>>
    %219 = vector.broadcast %218 : f32 to vector<1x256xf32>
    %220 = arith.mulf %219, %81 : vector<1x256xf32>
    %221 = arith.addf %217, %220 : vector<1x256xf32>
    %c1_90 = arith.constant 1 : index
    %c9_91 = arith.constant 9 : index
    %222 = memref.load %arg4[%c1_90, %c9_91] : memref<2x49xf32, #tpu.memory_space<smem>>
    %223 = vector.broadcast %222 : f32 to vector<1x256xf32>
    %224 = arith.mulf %223, %84 : vector<1x256xf32>
    %225 = arith.addf %221, %224 : vector<1x256xf32>
    %c0_92 = arith.constant 0 : index
    %c10 = arith.constant 10 : index
    %226 = memref.load %arg4[%c0_92, %c10] : memref<2x49xf32, #tpu.memory_space<smem>>
    %227 = vector.broadcast %226 : f32 to vector<1x256xf32>
    %228 = arith.mulf %227, %20 : vector<1x256xf32>
    %229 = arith.addf %225, %228 : vector<1x256xf32>
    %c1_93 = arith.constant 1 : index
    %c10_94 = arith.constant 10 : index
    %230 = memref.load %arg4[%c1_93, %c10_94] : memref<2x49xf32, #tpu.memory_space<smem>>
    %231 = vector.broadcast %230 : f32 to vector<1x256xf32>
    %232 = arith.mulf %231, %22 : vector<1x256xf32>
    %233 = arith.addf %229, %232 : vector<1x256xf32>
    %c0_95 = arith.constant 0 : index
    %c11 = arith.constant 11 : index
    %234 = memref.load %arg4[%c0_95, %c11] : memref<2x49xf32, #tpu.memory_space<smem>>
    %235 = vector.broadcast %234 : f32 to vector<1x256xf32>
    %236 = arith.mulf %235, %96 : vector<1x256xf32>
    %237 = arith.addf %233, %236 : vector<1x256xf32>
    %c1_96 = arith.constant 1 : index
    %c11_97 = arith.constant 11 : index
    %238 = memref.load %arg4[%c1_96, %c11_97] : memref<2x49xf32, #tpu.memory_space<smem>>
    %239 = vector.broadcast %238 : f32 to vector<1x256xf32>
    %240 = arith.mulf %239, %99 : vector<1x256xf32>
    %241 = arith.addf %237, %240 : vector<1x256xf32>
    %c0_98 = arith.constant 0 : index
    %c12 = arith.constant 12 : index
    %242 = memref.load %arg4[%c0_98, %c12] : memref<2x49xf32, #tpu.memory_space<smem>>
    %243 = vector.broadcast %242 : f32 to vector<1x256xf32>
    %244 = arith.mulf %243, %111 : vector<1x256xf32>
    %245 = arith.addf %241, %244 : vector<1x256xf32>
    %c1_99 = arith.constant 1 : index
    %c12_100 = arith.constant 12 : index
    %246 = memref.load %arg4[%c1_99, %c12_100] : memref<2x49xf32, #tpu.memory_space<smem>>
    %247 = vector.broadcast %246 : f32 to vector<1x256xf32>
    %248 = arith.mulf %247, %114 : vector<1x256xf32>
    %249 = arith.addf %245, %248 : vector<1x256xf32>
    %c0_101 = arith.constant 0 : index
    %c13 = arith.constant 13 : index
    %250 = memref.load %arg4[%c0_101, %c13] : memref<2x49xf32, #tpu.memory_space<smem>>
    %251 = vector.broadcast %250 : f32 to vector<1x256xf32>
    %252 = arith.mulf %251, %126 : vector<1x256xf32>
    %253 = arith.addf %249, %252 : vector<1x256xf32>
    %c1_102 = arith.constant 1 : index
    %c13_103 = arith.constant 13 : index
    %254 = memref.load %arg4[%c1_102, %c13_103] : memref<2x49xf32, #tpu.memory_space<smem>>
    %255 = vector.broadcast %254 : f32 to vector<1x256xf32>
    %256 = arith.mulf %255, %129 : vector<1x256xf32>
    %257 = arith.addf %253, %256 : vector<1x256xf32>
    %c32_i32 = arith.constant 32 : i32
    %258 = tpu.dynamic_rotate %257 by %c32_i32 dim 1 : vector<1x256xf32>, i32 -> vector<1x256xf32>
    %c-32_i32 = arith.constant -32 : i32
    %259 = vector.broadcast %c-32_i32 : i32 to vector<1x256xi32>
    %260 = arith.addi %23, %259 : vector<1x256xi32>
    %c0_i32_104 = arith.constant 0 : i32
    %261 = vector.broadcast %c0_i32_104 : i32 to vector<1x256xi32>
    %262 = arith.cmpi sge, %260, %261 : vector<1x256xi32>
    %c-32_i32_105 = arith.constant -32 : i32
    %263 = vector.broadcast %c-32_i32_105 : i32 to vector<1x256xi32>
    %264 = arith.addi %23, %263 : vector<1x256xi32>
    %c256_i32_106 = arith.constant 256 : i32
    %265 = vector.broadcast %c256_i32_106 : i32 to vector<1x256xi32>
    %266 = arith.cmpi slt, %264, %265 : vector<1x256xi32>
    %267 = arith.andi %262, %266 : vector<1x256xi1>
    %cst_107 = arith.constant 0.000000e+00 : f32
    %268 = vector.broadcast %cst_107 : f32 to vector<1x256xf32>
    %269 = arith.select %267, %258, %268 : vector<1x256xi1>, vector<1x256xf32>
    %270 = arith.addf %200, %269 : vector<1x256xf32>
    %cst_108 = arith.constant 0.000000e+00 : f32
    %271 = vector.broadcast %cst_108 : f32 to vector<1x256xf32>
    %c0_109 = arith.constant 0 : index
    %c14 = arith.constant 14 : index
    %272 = memref.load %arg4[%c0_109, %c14] : memref<2x49xf32, #tpu.memory_space<smem>>
    %273 = vector.broadcast %272 : f32 to vector<1x256xf32>
    %274 = arith.mulf %273, %51 : vector<1x256xf32>
    %275 = arith.addf %271, %274 : vector<1x256xf32>
    %c1_110 = arith.constant 1 : index
    %c14_111 = arith.constant 14 : index
    %276 = memref.load %arg4[%c1_110, %c14_111] : memref<2x49xf32, #tpu.memory_space<smem>>
    %277 = vector.broadcast %276 : f32 to vector<1x256xf32>
    %278 = arith.mulf %277, %54 : vector<1x256xf32>
    %279 = arith.addf %275, %278 : vector<1x256xf32>
    %c0_112 = arith.constant 0 : index
    %c15 = arith.constant 15 : index
    %280 = memref.load %arg4[%c0_112, %c15] : memref<2x49xf32, #tpu.memory_space<smem>>
    %281 = vector.broadcast %280 : f32 to vector<1x256xf32>
    %282 = arith.mulf %281, %66 : vector<1x256xf32>
    %283 = arith.addf %279, %282 : vector<1x256xf32>
    %c1_113 = arith.constant 1 : index
    %c15_114 = arith.constant 15 : index
    %284 = memref.load %arg4[%c1_113, %c15_114] : memref<2x49xf32, #tpu.memory_space<smem>>
    %285 = vector.broadcast %284 : f32 to vector<1x256xf32>
    %286 = arith.mulf %285, %69 : vector<1x256xf32>
    %287 = arith.addf %283, %286 : vector<1x256xf32>
    %c0_115 = arith.constant 0 : index
    %c16 = arith.constant 16 : index
    %288 = memref.load %arg4[%c0_115, %c16] : memref<2x49xf32, #tpu.memory_space<smem>>
    %289 = vector.broadcast %288 : f32 to vector<1x256xf32>
    %290 = arith.mulf %289, %81 : vector<1x256xf32>
    %291 = arith.addf %287, %290 : vector<1x256xf32>
    %c1_116 = arith.constant 1 : index
    %c16_117 = arith.constant 16 : index
    %292 = memref.load %arg4[%c1_116, %c16_117] : memref<2x49xf32, #tpu.memory_space<smem>>
    %293 = vector.broadcast %292 : f32 to vector<1x256xf32>
    %294 = arith.mulf %293, %84 : vector<1x256xf32>
    %295 = arith.addf %291, %294 : vector<1x256xf32>
    %c0_118 = arith.constant 0 : index
    %c17 = arith.constant 17 : index
    %296 = memref.load %arg4[%c0_118, %c17] : memref<2x49xf32, #tpu.memory_space<smem>>
    %297 = vector.broadcast %296 : f32 to vector<1x256xf32>
    %298 = arith.mulf %297, %20 : vector<1x256xf32>
    %299 = arith.addf %295, %298 : vector<1x256xf32>
    %c1_119 = arith.constant 1 : index
    %c17_120 = arith.constant 17 : index
    %300 = memref.load %arg4[%c1_119, %c17_120] : memref<2x49xf32, #tpu.memory_space<smem>>
    %301 = vector.broadcast %300 : f32 to vector<1x256xf32>
    %302 = arith.mulf %301, %22 : vector<1x256xf32>
    %303 = arith.addf %299, %302 : vector<1x256xf32>
    %c0_121 = arith.constant 0 : index
    %c18 = arith.constant 18 : index
    %304 = memref.load %arg4[%c0_121, %c18] : memref<2x49xf32, #tpu.memory_space<smem>>
    %305 = vector.broadcast %304 : f32 to vector<1x256xf32>
    %306 = arith.mulf %305, %96 : vector<1x256xf32>
    %307 = arith.addf %303, %306 : vector<1x256xf32>
    %c1_122 = arith.constant 1 : index
    %c18_123 = arith.constant 18 : index
    %308 = memref.load %arg4[%c1_122, %c18_123] : memref<2x49xf32, #tpu.memory_space<smem>>
    %309 = vector.broadcast %308 : f32 to vector<1x256xf32>
    %310 = arith.mulf %309, %99 : vector<1x256xf32>
    %311 = arith.addf %307, %310 : vector<1x256xf32>
    %c0_124 = arith.constant 0 : index
    %c19 = arith.constant 19 : index
    %312 = memref.load %arg4[%c0_124, %c19] : memref<2x49xf32, #tpu.memory_space<smem>>
    %313 = vector.broadcast %312 : f32 to vector<1x256xf32>
    %314 = arith.mulf %313, %111 : vector<1x256xf32>
    %315 = arith.addf %311, %314 : vector<1x256xf32>
    %c1_125 = arith.constant 1 : index
    %c19_126 = arith.constant 19 : index
    %316 = memref.load %arg4[%c1_125, %c19_126] : memref<2x49xf32, #tpu.memory_space<smem>>
    %317 = vector.broadcast %316 : f32 to vector<1x256xf32>
    %318 = arith.mulf %317, %114 : vector<1x256xf32>
    %319 = arith.addf %315, %318 : vector<1x256xf32>
    %c0_127 = arith.constant 0 : index
    %c20 = arith.constant 20 : index
    %320 = memref.load %arg4[%c0_127, %c20] : memref<2x49xf32, #tpu.memory_space<smem>>
    %321 = vector.broadcast %320 : f32 to vector<1x256xf32>
    %322 = arith.mulf %321, %126 : vector<1x256xf32>
    %323 = arith.addf %319, %322 : vector<1x256xf32>
    %c1_128 = arith.constant 1 : index
    %c20_129 = arith.constant 20 : index
    %324 = memref.load %arg4[%c1_128, %c20_129] : memref<2x49xf32, #tpu.memory_space<smem>>
    %325 = vector.broadcast %324 : f32 to vector<1x256xf32>
    %326 = arith.mulf %325, %129 : vector<1x256xf32>
    %327 = arith.addf %323, %326 : vector<1x256xf32>
    %c16_i32_130 = arith.constant 16 : i32
    %328 = tpu.dynamic_rotate %327 by %c16_i32_130 dim 1 : vector<1x256xf32>, i32 -> vector<1x256xf32>
    %c-16_i32 = arith.constant -16 : i32
    %329 = vector.broadcast %c-16_i32 : i32 to vector<1x256xi32>
    %330 = arith.addi %23, %329 : vector<1x256xi32>
    %c0_i32_131 = arith.constant 0 : i32
    %331 = vector.broadcast %c0_i32_131 : i32 to vector<1x256xi32>
    %332 = arith.cmpi sge, %330, %331 : vector<1x256xi32>
    %c-16_i32_132 = arith.constant -16 : i32
    %333 = vector.broadcast %c-16_i32_132 : i32 to vector<1x256xi32>
    %334 = arith.addi %23, %333 : vector<1x256xi32>
    %c256_i32_133 = arith.constant 256 : i32
    %335 = vector.broadcast %c256_i32_133 : i32 to vector<1x256xi32>
    %336 = arith.cmpi slt, %334, %335 : vector<1x256xi32>
    %337 = arith.andi %332, %336 : vector<1x256xi1>
    %cst_134 = arith.constant 0.000000e+00 : f32
    %338 = vector.broadcast %cst_134 : f32 to vector<1x256xf32>
    %339 = arith.select %337, %328, %338 : vector<1x256xi1>, vector<1x256xf32>
    %340 = arith.addf %270, %339 : vector<1x256xf32>
    %cst_135 = arith.constant 0.000000e+00 : f32
    %341 = vector.broadcast %cst_135 : f32 to vector<1x256xf32>
    %c0_136 = arith.constant 0 : index
    %c21 = arith.constant 21 : index
    %342 = memref.load %arg4[%c0_136, %c21] : memref<2x49xf32, #tpu.memory_space<smem>>
    %343 = vector.broadcast %342 : f32 to vector<1x256xf32>
    %344 = arith.mulf %343, %51 : vector<1x256xf32>
    %345 = arith.addf %341, %344 : vector<1x256xf32>
    %c1_137 = arith.constant 1 : index
    %c21_138 = arith.constant 21 : index
    %346 = memref.load %arg4[%c1_137, %c21_138] : memref<2x49xf32, #tpu.memory_space<smem>>
    %347 = vector.broadcast %346 : f32 to vector<1x256xf32>
    %348 = arith.mulf %347, %54 : vector<1x256xf32>
    %349 = arith.addf %345, %348 : vector<1x256xf32>
    %c0_139 = arith.constant 0 : index
    %c22 = arith.constant 22 : index
    %350 = memref.load %arg4[%c0_139, %c22] : memref<2x49xf32, #tpu.memory_space<smem>>
    %351 = vector.broadcast %350 : f32 to vector<1x256xf32>
    %352 = arith.mulf %351, %66 : vector<1x256xf32>
    %353 = arith.addf %349, %352 : vector<1x256xf32>
    %c1_140 = arith.constant 1 : index
    %c22_141 = arith.constant 22 : index
    %354 = memref.load %arg4[%c1_140, %c22_141] : memref<2x49xf32, #tpu.memory_space<smem>>
    %355 = vector.broadcast %354 : f32 to vector<1x256xf32>
    %356 = arith.mulf %355, %69 : vector<1x256xf32>
    %357 = arith.addf %353, %356 : vector<1x256xf32>
    %c0_142 = arith.constant 0 : index
    %c23 = arith.constant 23 : index
    %358 = memref.load %arg4[%c0_142, %c23] : memref<2x49xf32, #tpu.memory_space<smem>>
    %359 = vector.broadcast %358 : f32 to vector<1x256xf32>
    %360 = arith.mulf %359, %81 : vector<1x256xf32>
    %361 = arith.addf %357, %360 : vector<1x256xf32>
    %c1_143 = arith.constant 1 : index
    %c23_144 = arith.constant 23 : index
    %362 = memref.load %arg4[%c1_143, %c23_144] : memref<2x49xf32, #tpu.memory_space<smem>>
    %363 = vector.broadcast %362 : f32 to vector<1x256xf32>
    %364 = arith.mulf %363, %84 : vector<1x256xf32>
    %365 = arith.addf %361, %364 : vector<1x256xf32>
    %c0_145 = arith.constant 0 : index
    %c24 = arith.constant 24 : index
    %366 = memref.load %arg4[%c0_145, %c24] : memref<2x49xf32, #tpu.memory_space<smem>>
    %367 = vector.broadcast %366 : f32 to vector<1x256xf32>
    %368 = arith.mulf %367, %20 : vector<1x256xf32>
    %369 = arith.addf %365, %368 : vector<1x256xf32>
    %c1_146 = arith.constant 1 : index
    %c24_147 = arith.constant 24 : index
    %370 = memref.load %arg4[%c1_146, %c24_147] : memref<2x49xf32, #tpu.memory_space<smem>>
    %371 = vector.broadcast %370 : f32 to vector<1x256xf32>
    %372 = arith.mulf %371, %22 : vector<1x256xf32>
    %373 = arith.addf %369, %372 : vector<1x256xf32>
    %c0_148 = arith.constant 0 : index
    %c25 = arith.constant 25 : index
    %374 = memref.load %arg4[%c0_148, %c25] : memref<2x49xf32, #tpu.memory_space<smem>>
    %375 = vector.broadcast %374 : f32 to vector<1x256xf32>
    %376 = arith.mulf %375, %96 : vector<1x256xf32>
    %377 = arith.addf %373, %376 : vector<1x256xf32>
    %c1_149 = arith.constant 1 : index
    %c25_150 = arith.constant 25 : index
    %378 = memref.load %arg4[%c1_149, %c25_150] : memref<2x49xf32, #tpu.memory_space<smem>>
    %379 = vector.broadcast %378 : f32 to vector<1x256xf32>
    %380 = arith.mulf %379, %99 : vector<1x256xf32>
    %381 = arith.addf %377, %380 : vector<1x256xf32>
    %c0_151 = arith.constant 0 : index
    %c26 = arith.constant 26 : index
    %382 = memref.load %arg4[%c0_151, %c26] : memref<2x49xf32, #tpu.memory_space<smem>>
    %383 = vector.broadcast %382 : f32 to vector<1x256xf32>
    %384 = arith.mulf %383, %111 : vector<1x256xf32>
    %385 = arith.addf %381, %384 : vector<1x256xf32>
    %c1_152 = arith.constant 1 : index
    %c26_153 = arith.constant 26 : index
    %386 = memref.load %arg4[%c1_152, %c26_153] : memref<2x49xf32, #tpu.memory_space<smem>>
    %387 = vector.broadcast %386 : f32 to vector<1x256xf32>
    %388 = arith.mulf %387, %114 : vector<1x256xf32>
    %389 = arith.addf %385, %388 : vector<1x256xf32>
    %c0_154 = arith.constant 0 : index
    %c27 = arith.constant 27 : index
    %390 = memref.load %arg4[%c0_154, %c27] : memref<2x49xf32, #tpu.memory_space<smem>>
    %391 = vector.broadcast %390 : f32 to vector<1x256xf32>
    %392 = arith.mulf %391, %126 : vector<1x256xf32>
    %393 = arith.addf %389, %392 : vector<1x256xf32>
    %c1_155 = arith.constant 1 : index
    %c27_156 = arith.constant 27 : index
    %394 = memref.load %arg4[%c1_155, %c27_156] : memref<2x49xf32, #tpu.memory_space<smem>>
    %395 = vector.broadcast %394 : f32 to vector<1x256xf32>
    %396 = arith.mulf %395, %129 : vector<1x256xf32>
    %397 = arith.addf %393, %396 : vector<1x256xf32>
    %398 = arith.addf %340, %397 : vector<1x256xf32>
    %cst_157 = arith.constant 0.000000e+00 : f32
    %399 = vector.broadcast %cst_157 : f32 to vector<1x256xf32>
    %c0_158 = arith.constant 0 : index
    %c28 = arith.constant 28 : index
    %400 = memref.load %arg4[%c0_158, %c28] : memref<2x49xf32, #tpu.memory_space<smem>>
    %401 = vector.broadcast %400 : f32 to vector<1x256xf32>
    %402 = arith.mulf %401, %51 : vector<1x256xf32>
    %403 = arith.addf %399, %402 : vector<1x256xf32>
    %c1_159 = arith.constant 1 : index
    %c28_160 = arith.constant 28 : index
    %404 = memref.load %arg4[%c1_159, %c28_160] : memref<2x49xf32, #tpu.memory_space<smem>>
    %405 = vector.broadcast %404 : f32 to vector<1x256xf32>
    %406 = arith.mulf %405, %54 : vector<1x256xf32>
    %407 = arith.addf %403, %406 : vector<1x256xf32>
    %c0_161 = arith.constant 0 : index
    %c29 = arith.constant 29 : index
    %408 = memref.load %arg4[%c0_161, %c29] : memref<2x49xf32, #tpu.memory_space<smem>>
    %409 = vector.broadcast %408 : f32 to vector<1x256xf32>
    %410 = arith.mulf %409, %66 : vector<1x256xf32>
    %411 = arith.addf %407, %410 : vector<1x256xf32>
    %c1_162 = arith.constant 1 : index
    %c29_163 = arith.constant 29 : index
    %412 = memref.load %arg4[%c1_162, %c29_163] : memref<2x49xf32, #tpu.memory_space<smem>>
    %413 = vector.broadcast %412 : f32 to vector<1x256xf32>
    %414 = arith.mulf %413, %69 : vector<1x256xf32>
    %415 = arith.addf %411, %414 : vector<1x256xf32>
    %c0_164 = arith.constant 0 : index
    %c30 = arith.constant 30 : index
    %416 = memref.load %arg4[%c0_164, %c30] : memref<2x49xf32, #tpu.memory_space<smem>>
    %417 = vector.broadcast %416 : f32 to vector<1x256xf32>
    %418 = arith.mulf %417, %81 : vector<1x256xf32>
    %419 = arith.addf %415, %418 : vector<1x256xf32>
    %c1_165 = arith.constant 1 : index
    %c30_166 = arith.constant 30 : index
    %420 = memref.load %arg4[%c1_165, %c30_166] : memref<2x49xf32, #tpu.memory_space<smem>>
    %421 = vector.broadcast %420 : f32 to vector<1x256xf32>
    %422 = arith.mulf %421, %84 : vector<1x256xf32>
    %423 = arith.addf %419, %422 : vector<1x256xf32>
    %c0_167 = arith.constant 0 : index
    %c31 = arith.constant 31 : index
    %424 = memref.load %arg4[%c0_167, %c31] : memref<2x49xf32, #tpu.memory_space<smem>>
    %425 = vector.broadcast %424 : f32 to vector<1x256xf32>
    %426 = arith.mulf %425, %20 : vector<1x256xf32>
    %427 = arith.addf %423, %426 : vector<1x256xf32>
    %c1_168 = arith.constant 1 : index
    %c31_169 = arith.constant 31 : index
    %428 = memref.load %arg4[%c1_168, %c31_169] : memref<2x49xf32, #tpu.memory_space<smem>>
    %429 = vector.broadcast %428 : f32 to vector<1x256xf32>
    %430 = arith.mulf %429, %22 : vector<1x256xf32>
    %431 = arith.addf %427, %430 : vector<1x256xf32>
    %c0_170 = arith.constant 0 : index
    %c32 = arith.constant 32 : index
    %432 = memref.load %arg4[%c0_170, %c32] : memref<2x49xf32, #tpu.memory_space<smem>>
    %433 = vector.broadcast %432 : f32 to vector<1x256xf32>
    %434 = arith.mulf %433, %96 : vector<1x256xf32>
    %435 = arith.addf %431, %434 : vector<1x256xf32>
    %c1_171 = arith.constant 1 : index
    %c32_172 = arith.constant 32 : index
    %436 = memref.load %arg4[%c1_171, %c32_172] : memref<2x49xf32, #tpu.memory_space<smem>>
    %437 = vector.broadcast %436 : f32 to vector<1x256xf32>
    %438 = arith.mulf %437, %99 : vector<1x256xf32>
    %439 = arith.addf %435, %438 : vector<1x256xf32>
    %c0_173 = arith.constant 0 : index
    %c33 = arith.constant 33 : index
    %440 = memref.load %arg4[%c0_173, %c33] : memref<2x49xf32, #tpu.memory_space<smem>>
    %441 = vector.broadcast %440 : f32 to vector<1x256xf32>
    %442 = arith.mulf %441, %111 : vector<1x256xf32>
    %443 = arith.addf %439, %442 : vector<1x256xf32>
    %c1_174 = arith.constant 1 : index
    %c33_175 = arith.constant 33 : index
    %444 = memref.load %arg4[%c1_174, %c33_175] : memref<2x49xf32, #tpu.memory_space<smem>>
    %445 = vector.broadcast %444 : f32 to vector<1x256xf32>
    %446 = arith.mulf %445, %114 : vector<1x256xf32>
    %447 = arith.addf %443, %446 : vector<1x256xf32>
    %c0_176 = arith.constant 0 : index
    %c34 = arith.constant 34 : index
    %448 = memref.load %arg4[%c0_176, %c34] : memref<2x49xf32, #tpu.memory_space<smem>>
    %449 = vector.broadcast %448 : f32 to vector<1x256xf32>
    %450 = arith.mulf %449, %126 : vector<1x256xf32>
    %451 = arith.addf %447, %450 : vector<1x256xf32>
    %c1_177 = arith.constant 1 : index
    %c34_178 = arith.constant 34 : index
    %452 = memref.load %arg4[%c1_177, %c34_178] : memref<2x49xf32, #tpu.memory_space<smem>>
    %453 = vector.broadcast %452 : f32 to vector<1x256xf32>
    %454 = arith.mulf %453, %129 : vector<1x256xf32>
    %455 = arith.addf %451, %454 : vector<1x256xf32>
    %c240_i32 = arith.constant 240 : i32
    %456 = tpu.dynamic_rotate %455 by %c240_i32 dim 1 : vector<1x256xf32>, i32 -> vector<1x256xf32>
    %c16_i32_179 = arith.constant 16 : i32
    %457 = vector.broadcast %c16_i32_179 : i32 to vector<1x256xi32>
    %458 = arith.addi %23, %457 : vector<1x256xi32>
    %c0_i32_180 = arith.constant 0 : i32
    %459 = vector.broadcast %c0_i32_180 : i32 to vector<1x256xi32>
    %460 = arith.cmpi sge, %458, %459 : vector<1x256xi32>
    %c16_i32_181 = arith.constant 16 : i32
    %461 = vector.broadcast %c16_i32_181 : i32 to vector<1x256xi32>
    %462 = arith.addi %23, %461 : vector<1x256xi32>
    %c256_i32_182 = arith.constant 256 : i32
    %463 = vector.broadcast %c256_i32_182 : i32 to vector<1x256xi32>
    %464 = arith.cmpi slt, %462, %463 : vector<1x256xi32>
    %465 = arith.andi %460, %464 : vector<1x256xi1>
    %cst_183 = arith.constant 0.000000e+00 : f32
    %466 = vector.broadcast %cst_183 : f32 to vector<1x256xf32>
    %467 = arith.select %465, %456, %466 : vector<1x256xi1>, vector<1x256xf32>
    %468 = arith.addf %398, %467 : vector<1x256xf32>
    %cst_184 = arith.constant 0.000000e+00 : f32
    %469 = vector.broadcast %cst_184 : f32 to vector<1x256xf32>
    %c0_185 = arith.constant 0 : index
    %c35 = arith.constant 35 : index
    %470 = memref.load %arg4[%c0_185, %c35] : memref<2x49xf32, #tpu.memory_space<smem>>
    %471 = vector.broadcast %470 : f32 to vector<1x256xf32>
    %472 = arith.mulf %471, %51 : vector<1x256xf32>
    %473 = arith.addf %469, %472 : vector<1x256xf32>
    %c1_186 = arith.constant 1 : index
    %c35_187 = arith.constant 35 : index
    %474 = memref.load %arg4[%c1_186, %c35_187] : memref<2x49xf32, #tpu.memory_space<smem>>
    %475 = vector.broadcast %474 : f32 to vector<1x256xf32>
    %476 = arith.mulf %475, %54 : vector<1x256xf32>
    %477 = arith.addf %473, %476 : vector<1x256xf32>
    %c0_188 = arith.constant 0 : index
    %c36 = arith.constant 36 : index
    %478 = memref.load %arg4[%c0_188, %c36] : memref<2x49xf32, #tpu.memory_space<smem>>
    %479 = vector.broadcast %478 : f32 to vector<1x256xf32>
    %480 = arith.mulf %479, %66 : vector<1x256xf32>
    %481 = arith.addf %477, %480 : vector<1x256xf32>
    %c1_189 = arith.constant 1 : index
    %c36_190 = arith.constant 36 : index
    %482 = memref.load %arg4[%c1_189, %c36_190] : memref<2x49xf32, #tpu.memory_space<smem>>
    %483 = vector.broadcast %482 : f32 to vector<1x256xf32>
    %484 = arith.mulf %483, %69 : vector<1x256xf32>
    %485 = arith.addf %481, %484 : vector<1x256xf32>
    %c0_191 = arith.constant 0 : index
    %c37 = arith.constant 37 : index
    %486 = memref.load %arg4[%c0_191, %c37] : memref<2x49xf32, #tpu.memory_space<smem>>
    %487 = vector.broadcast %486 : f32 to vector<1x256xf32>
    %488 = arith.mulf %487, %81 : vector<1x256xf32>
    %489 = arith.addf %485, %488 : vector<1x256xf32>
    %c1_192 = arith.constant 1 : index
    %c37_193 = arith.constant 37 : index
    %490 = memref.load %arg4[%c1_192, %c37_193] : memref<2x49xf32, #tpu.memory_space<smem>>
    %491 = vector.broadcast %490 : f32 to vector<1x256xf32>
    %492 = arith.mulf %491, %84 : vector<1x256xf32>
    %493 = arith.addf %489, %492 : vector<1x256xf32>
    %c0_194 = arith.constant 0 : index
    %c38 = arith.constant 38 : index
    %494 = memref.load %arg4[%c0_194, %c38] : memref<2x49xf32, #tpu.memory_space<smem>>
    %495 = vector.broadcast %494 : f32 to vector<1x256xf32>
    %496 = arith.mulf %495, %20 : vector<1x256xf32>
    %497 = arith.addf %493, %496 : vector<1x256xf32>
    %c1_195 = arith.constant 1 : index
    %c38_196 = arith.constant 38 : index
    %498 = memref.load %arg4[%c1_195, %c38_196] : memref<2x49xf32, #tpu.memory_space<smem>>
    %499 = vector.broadcast %498 : f32 to vector<1x256xf32>
    %500 = arith.mulf %499, %22 : vector<1x256xf32>
    %501 = arith.addf %497, %500 : vector<1x256xf32>
    %c0_197 = arith.constant 0 : index
    %c39 = arith.constant 39 : index
    %502 = memref.load %arg4[%c0_197, %c39] : memref<2x49xf32, #tpu.memory_space<smem>>
    %503 = vector.broadcast %502 : f32 to vector<1x256xf32>
    %504 = arith.mulf %503, %96 : vector<1x256xf32>
    %505 = arith.addf %501, %504 : vector<1x256xf32>
    %c1_198 = arith.constant 1 : index
    %c39_199 = arith.constant 39 : index
    %506 = memref.load %arg4[%c1_198, %c39_199] : memref<2x49xf32, #tpu.memory_space<smem>>
    %507 = vector.broadcast %506 : f32 to vector<1x256xf32>
    %508 = arith.mulf %507, %99 : vector<1x256xf32>
    %509 = arith.addf %505, %508 : vector<1x256xf32>
    %c0_200 = arith.constant 0 : index
    %c40 = arith.constant 40 : index
    %510 = memref.load %arg4[%c0_200, %c40] : memref<2x49xf32, #tpu.memory_space<smem>>
    %511 = vector.broadcast %510 : f32 to vector<1x256xf32>
    %512 = arith.mulf %511, %111 : vector<1x256xf32>
    %513 = arith.addf %509, %512 : vector<1x256xf32>
    %c1_201 = arith.constant 1 : index
    %c40_202 = arith.constant 40 : index
    %514 = memref.load %arg4[%c1_201, %c40_202] : memref<2x49xf32, #tpu.memory_space<smem>>
    %515 = vector.broadcast %514 : f32 to vector<1x256xf32>
    %516 = arith.mulf %515, %114 : vector<1x256xf32>
    %517 = arith.addf %513, %516 : vector<1x256xf32>
    %c0_203 = arith.constant 0 : index
    %c41 = arith.constant 41 : index
    %518 = memref.load %arg4[%c0_203, %c41] : memref<2x49xf32, #tpu.memory_space<smem>>
    %519 = vector.broadcast %518 : f32 to vector<1x256xf32>
    %520 = arith.mulf %519, %126 : vector<1x256xf32>
    %521 = arith.addf %517, %520 : vector<1x256xf32>
    %c1_204 = arith.constant 1 : index
    %c41_205 = arith.constant 41 : index
    %522 = memref.load %arg4[%c1_204, %c41_205] : memref<2x49xf32, #tpu.memory_space<smem>>
    %523 = vector.broadcast %522 : f32 to vector<1x256xf32>
    %524 = arith.mulf %523, %129 : vector<1x256xf32>
    %525 = arith.addf %521, %524 : vector<1x256xf32>
    %c224_i32 = arith.constant 224 : i32
    %526 = tpu.dynamic_rotate %525 by %c224_i32 dim 1 : vector<1x256xf32>, i32 -> vector<1x256xf32>
    %c32_i32_206 = arith.constant 32 : i32
    %527 = vector.broadcast %c32_i32_206 : i32 to vector<1x256xi32>
    %528 = arith.addi %23, %527 : vector<1x256xi32>
    %c0_i32_207 = arith.constant 0 : i32
    %529 = vector.broadcast %c0_i32_207 : i32 to vector<1x256xi32>
    %530 = arith.cmpi sge, %528, %529 : vector<1x256xi32>
    %c32_i32_208 = arith.constant 32 : i32
    %531 = vector.broadcast %c32_i32_208 : i32 to vector<1x256xi32>
    %532 = arith.addi %23, %531 : vector<1x256xi32>
    %c256_i32_209 = arith.constant 256 : i32
    %533 = vector.broadcast %c256_i32_209 : i32 to vector<1x256xi32>
    %534 = arith.cmpi slt, %532, %533 : vector<1x256xi32>
    %535 = arith.andi %530, %534 : vector<1x256xi1>
    %cst_210 = arith.constant 0.000000e+00 : f32
    %536 = vector.broadcast %cst_210 : f32 to vector<1x256xf32>
    %537 = arith.select %535, %526, %536 : vector<1x256xi1>, vector<1x256xf32>
    %538 = arith.addf %468, %537 : vector<1x256xf32>
    %cst_211 = arith.constant 0.000000e+00 : f32
    %539 = vector.broadcast %cst_211 : f32 to vector<1x256xf32>
    %c0_212 = arith.constant 0 : index
    %c42 = arith.constant 42 : index
    %540 = memref.load %arg4[%c0_212, %c42] : memref<2x49xf32, #tpu.memory_space<smem>>
    %541 = vector.broadcast %540 : f32 to vector<1x256xf32>
    %542 = arith.mulf %541, %51 : vector<1x256xf32>
    %543 = arith.addf %539, %542 : vector<1x256xf32>
    %c1_213 = arith.constant 1 : index
    %c42_214 = arith.constant 42 : index
    %544 = memref.load %arg4[%c1_213, %c42_214] : memref<2x49xf32, #tpu.memory_space<smem>>
    %545 = vector.broadcast %544 : f32 to vector<1x256xf32>
    %546 = arith.mulf %545, %54 : vector<1x256xf32>
    %547 = arith.addf %543, %546 : vector<1x256xf32>
    %c0_215 = arith.constant 0 : index
    %c43 = arith.constant 43 : index
    %548 = memref.load %arg4[%c0_215, %c43] : memref<2x49xf32, #tpu.memory_space<smem>>
    %549 = vector.broadcast %548 : f32 to vector<1x256xf32>
    %550 = arith.mulf %549, %66 : vector<1x256xf32>
    %551 = arith.addf %547, %550 : vector<1x256xf32>
    %c1_216 = arith.constant 1 : index
    %c43_217 = arith.constant 43 : index
    %552 = memref.load %arg4[%c1_216, %c43_217] : memref<2x49xf32, #tpu.memory_space<smem>>
    %553 = vector.broadcast %552 : f32 to vector<1x256xf32>
    %554 = arith.mulf %553, %69 : vector<1x256xf32>
    %555 = arith.addf %551, %554 : vector<1x256xf32>
    %c0_218 = arith.constant 0 : index
    %c44 = arith.constant 44 : index
    %556 = memref.load %arg4[%c0_218, %c44] : memref<2x49xf32, #tpu.memory_space<smem>>
    %557 = vector.broadcast %556 : f32 to vector<1x256xf32>
    %558 = arith.mulf %557, %81 : vector<1x256xf32>
    %559 = arith.addf %555, %558 : vector<1x256xf32>
    %c1_219 = arith.constant 1 : index
    %c44_220 = arith.constant 44 : index
    %560 = memref.load %arg4[%c1_219, %c44_220] : memref<2x49xf32, #tpu.memory_space<smem>>
    %561 = vector.broadcast %560 : f32 to vector<1x256xf32>
    %562 = arith.mulf %561, %84 : vector<1x256xf32>
    %563 = arith.addf %559, %562 : vector<1x256xf32>
    %c0_221 = arith.constant 0 : index
    %c45 = arith.constant 45 : index
    %564 = memref.load %arg4[%c0_221, %c45] : memref<2x49xf32, #tpu.memory_space<smem>>
    %565 = vector.broadcast %564 : f32 to vector<1x256xf32>
    %566 = arith.mulf %565, %20 : vector<1x256xf32>
    %567 = arith.addf %563, %566 : vector<1x256xf32>
    %c1_222 = arith.constant 1 : index
    %c45_223 = arith.constant 45 : index
    %568 = memref.load %arg4[%c1_222, %c45_223] : memref<2x49xf32, #tpu.memory_space<smem>>
    %569 = vector.broadcast %568 : f32 to vector<1x256xf32>
    %570 = arith.mulf %569, %22 : vector<1x256xf32>
    %571 = arith.addf %567, %570 : vector<1x256xf32>
    %c0_224 = arith.constant 0 : index
    %c46 = arith.constant 46 : index
    %572 = memref.load %arg4[%c0_224, %c46] : memref<2x49xf32, #tpu.memory_space<smem>>
    %573 = vector.broadcast %572 : f32 to vector<1x256xf32>
    %574 = arith.mulf %573, %96 : vector<1x256xf32>
    %575 = arith.addf %571, %574 : vector<1x256xf32>
    %c1_225 = arith.constant 1 : index
    %c46_226 = arith.constant 46 : index
    %576 = memref.load %arg4[%c1_225, %c46_226] : memref<2x49xf32, #tpu.memory_space<smem>>
    %577 = vector.broadcast %576 : f32 to vector<1x256xf32>
    %578 = arith.mulf %577, %99 : vector<1x256xf32>
    %579 = arith.addf %575, %578 : vector<1x256xf32>
    %c0_227 = arith.constant 0 : index
    %c47 = arith.constant 47 : index
    %580 = memref.load %arg4[%c0_227, %c47] : memref<2x49xf32, #tpu.memory_space<smem>>
    %581 = vector.broadcast %580 : f32 to vector<1x256xf32>
    %582 = arith.mulf %581, %111 : vector<1x256xf32>
    %583 = arith.addf %579, %582 : vector<1x256xf32>
    %c1_228 = arith.constant 1 : index
    %c47_229 = arith.constant 47 : index
    %584 = memref.load %arg4[%c1_228, %c47_229] : memref<2x49xf32, #tpu.memory_space<smem>>
    %585 = vector.broadcast %584 : f32 to vector<1x256xf32>
    %586 = arith.mulf %585, %114 : vector<1x256xf32>
    %587 = arith.addf %583, %586 : vector<1x256xf32>
    %c0_230 = arith.constant 0 : index
    %c48 = arith.constant 48 : index
    %588 = memref.load %arg4[%c0_230, %c48] : memref<2x49xf32, #tpu.memory_space<smem>>
    %589 = vector.broadcast %588 : f32 to vector<1x256xf32>
    %590 = arith.mulf %589, %126 : vector<1x256xf32>
    %591 = arith.addf %587, %590 : vector<1x256xf32>
    %c1_231 = arith.constant 1 : index
    %c48_232 = arith.constant 48 : index
    %592 = memref.load %arg4[%c1_231, %c48_232] : memref<2x49xf32, #tpu.memory_space<smem>>
    %593 = vector.broadcast %592 : f32 to vector<1x256xf32>
    %594 = arith.mulf %593, %129 : vector<1x256xf32>
    %595 = arith.addf %591, %594 : vector<1x256xf32>
    %c208_i32 = arith.constant 208 : i32
    %596 = tpu.dynamic_rotate %595 by %c208_i32 dim 1 : vector<1x256xf32>, i32 -> vector<1x256xf32>
    %c48_i32_233 = arith.constant 48 : i32
    %597 = vector.broadcast %c48_i32_233 : i32 to vector<1x256xi32>
    %598 = arith.addi %23, %597 : vector<1x256xi32>
    %c0_i32_234 = arith.constant 0 : i32
    %599 = vector.broadcast %c0_i32_234 : i32 to vector<1x256xi32>
    %600 = arith.cmpi sge, %598, %599 : vector<1x256xi32>
    %c48_i32_235 = arith.constant 48 : i32
    %601 = vector.broadcast %c48_i32_235 : i32 to vector<1x256xi32>
    %602 = arith.addi %23, %601 : vector<1x256xi32>
    %c256_i32_236 = arith.constant 256 : i32
    %603 = vector.broadcast %c256_i32_236 : i32 to vector<1x256xi32>
    %604 = arith.cmpi slt, %602, %603 : vector<1x256xi32>
    %605 = arith.andi %600, %604 : vector<1x256xi1>
    %cst_237 = arith.constant 0.000000e+00 : f32
    %606 = vector.broadcast %cst_237 : f32 to vector<1x256xf32>
    %607 = arith.select %605, %596, %606 : vector<1x256xi1>, vector<1x256xf32>
    %608 = arith.addf %538, %607 : vector<1x256xf32>
    %609 = arith.negf %608 : vector<1x256xf32>
    %610 = math.exp %609 : vector<1x256xf32>
    %cst_238 = arith.constant 1.000000e+00 : f32
    %611 = vector.broadcast %cst_238 : f32 to vector<1x256xf32>
    %612 = arith.addf %611, %610 : vector<1x256xf32>
    %613 = arith.divf %611, %612 : vector<1x256xf32>
    %614 = vector.broadcast %613 : vector<1x256xf32> to vector<4x256xf32>
    %615 = arith.mulf %16, %614 : vector<4x256xf32>
    %c0_239 = arith.constant 0 : index
    %c0_240 = arith.constant 0 : index
    %c0_241 = arith.constant 0 : index
    %616 = vector.load %arg5[%c0_239, %c0_240, %c0_241] : memref<1x4x256xf32, #tpu.memory_space<vmem>>, vector<1x4x256xf32>
    %617 = vector.shape_cast %616 : vector<1x4x256xf32> to vector<4x256xf32>
    %618 = vector.shape_cast %615 : vector<4x256xf32> to vector<1x4x256xf32>
    tpu.vector_store %arg5[%c0_239, %c0_240, %c0_241], %618 {strides = array<i32>} : memref<1x4x256xf32, #tpu.memory_space<vmem>>, vector<1x4x256xf32>,
    return
  }
  func.func @transform_0(%arg0: i32) -> (i32, i32, i32) {
    %c0_i32 = arith.constant 0 : i32
    %c0_i32_0 = arith.constant 0 : i32
    %c0_i32_1 = arith.constant 0 : i32
    return %arg0, %c0_i32, %c0_i32_0 : i32, i32, i32
  }
  func.func @transform_1(%arg0: i32) -> (i32, i32) {
    %c0_i32 = arith.constant 0 : i32
    %c0_i32_0 = arith.constant 0 : i32
    %c0_i32_1 = arith.constant 0 : i32
    return %c0_i32, %c0_i32_0 : i32, i32
  }
  func.func @transform_2(%arg0: i32) -> (i32, i32) {
    %c0_i32 = arith.constant 0 : i32
    %c0_i32_0 = arith.constant 0 : i32
    %c0_i32_1 = arith.constant 0 : i32
    return %c0_i32, %c0_i32_0 : i32, i32
  }
  func.func @transform_3(%arg0: i32) -> (i32, i32) {
    %c0_i32 = arith.constant 0 : i32
    %c0_i32_0 = arith.constant 0 : i32
    %c0_i32_1 = arith.constant 0 : i32
    return %c0_i32, %c0_i32_0 : i32, i32
  }
  func.func @transform_4(%arg0: i32) -> (i32, i32, i32) {
    %c0_i32 = arith.constant 0 : i32
    %c0_i32_0 = arith.constant 0 : i32
    %c0_i32_1 = arith.constant 0 : i32
    return %arg0, %c0_i32, %c0_i32_0 : i32, i32, i32
  }
}

</mosaic_0001>

<bundles_post_ra>
// kernel: tpu_custom_call.1
= control target key start
LH: loop header
LB: loop body
LE: loop exit
PB: predicated region body
PF: predicated region fallthrough
CT: control target
= control target key end

     0   :  { %s3236_s0 = inlined_call_operand.hbm [shape: f32[2,4,256], index: 0, kind: input, shape index: {}]   ;;  %s3237_s1 = inlined_call_operand.vmem [shape: f32[4,4], index: 1, kind: input, shape index: {}]   ;;  %s3238_s2 = inlined_call_operand.vmem [shape: f32[4,1], index: 2, kind: input, shape index: {}]   ;;  %s3239_s3 = inlined_call_operand.vmem [shape: f32[2,49], index: 3, kind: input, shape index: {}]   ;;  %s3240_s4 = inlined_call_operand.hbm [shape: f32[2,4,256], index: 4, kind: output, shape index: {}]  }
   0x1   :  { %3375 = sst [smem:[#allocation140_spill]] %s3236_s0 }
   0x2   :  { %3376 = sst [smem:[#allocation141_spill]] %s3237_s1 }
   0x3   :  { %3377 = sst [smem:[#allocation142_spill]] %s3238_s2 }
   0x4   :  { %3378 = sst [smem:[#allocation143_spill]] %s3239_s3 }
   0x5   :  { %3379 = sst [smem:[#allocation144_spill]] %s3240_s4 }
   0x6   :  { %9 = vsyncpa [#allocation3], 0 }
   0x7   :  { %11 = vsyncpa [#allocation3 + $0x1], 0 }
   0x8   :  { %12 = vsyncpa [#allocation5], 0 }
   0x9   :  { %13 = vsyncpa [#allocation4], 0 }
   0xa   :  { %15 = vsyncpa [#allocation4 + $0x1], 0  ;;  %s1749_s15 = smov 0   ;;  %s1751_s16 = smov 0  }
   0xb   :  { %s1753_s17 = smov 0   ;;  %s1755_s18 = smov 0  }
   0xc LB: > { %3380 = sst [smem:[#allocation11_spill]] %s1691_s15  ;;  %s1770_s19 = sadd.s32 4294967295, %s1703_s18   ;;  %s1703_s18 = sphi %s1755_s18, %s3848_s18   ;;  %s1699_s17 = sphi %s1753_s17, %s3851_s17   ;;  %s1695_s16 = sphi %s1751_s16, %s3850_s16   ;;  %s1691_s15 = sphi %s1749_s15, %s3849_s15  }
   0xd   : > { %3381 = sst [smem:[#allocation12_spill]] %s1695_s16  ;;  %s1374_s20 = sadd.s32 4294967294, %s1703_s18  }
   0xe   : > { %3382 = sst [smem:[#allocation13_spill]] %s1699_s17  ;;  %p41_p0 = scmp.ne.s32.totalorder %s1695_s16, %s1691_s15 }
   0xf   : > { %3383 = sst [smem:[#allocation14_spill]] %s1703_s18  ;;  %p3241_p1 = scmp.eq.s32.totalorder %s1770_s19, 0 }
  0x10   : > { %3384 = sst [smem:[#allocation15_spill]] %s1770_s19  ;;  %p134_p3 = scmp.eq.s32.totalorder %s1374_s20, 1 }
  0x11   : > { %p1779_p4 = por %p3241_p1, %p41_p0  ;;  %p1375_p5 = scmp.ge.s32.totalorder %s1703_s18, 1 }
  0x12   : > { %p1784_p6 = por %p134_p3, %p41_p0  ;;  %p141_p7 = scmp.lt.s32.totalorder %s1703_s18, 3 }
  0x13   : > { %s3385_s21 = scalar_select %p1779_p4, 1, 0 }
  0x14   : > { %s3386_s22 = scalar_select %p1784_p6, 1, 0 }
  0x15   : > { %s3388_s3 = sld [smem:[#allocation143_spill]]  ;;  %p1792_p8 = pnand %p1375_p5, %p141_p7 }
  0x16   : > { %3387 = sst [smem:[#allocation16_spill]] %s3386_s22  ;;  %s1800_s27 = sadd.s32 1, %s1703_s18  }
  0x17   : > { %p1509_p10 = pneg %p1792_p8  ;;  %3390 = sst [smem:[#allocation17_spill]] %s1800_s27 }
  0x18   : > { %s25_s29 = ssub.s32 %s1703_s18, %s1800_s27  ;;  %s28_s5 = sadd.s32 1, %s1699_s17 }
  0x19   : > { %p1804_p11 = pnand %p1509_p10, %p3241_p1  ;;  %p1810_p12 = scmp.eq.s32.totalorder %s25_s29, 0 }
  0x1a   : > { %p35_p13 = scmp.ne.s32.totalorder %s1699_s17, %s1695_s16 }
  0x1b   : > { %s160_s25 = sshll.u32 %s3388_s3, 4  ;;  %p1590_p3 = pneg %p1804_p11  ;;  %s161_s25 = int_to_ptr.vmem [resolvable:$true] %s160_s25 }
  0x1c   : > { %s1588_s6 = scalar_lea.vmem %s161_s25, 32  ;;  %p1596_p9 = scmp.lt.s32.totalorder %s161_s25, %s161_s25 }
  0x1d   : > { %p1589_p0 = scmp.ne.s32.totalorder %s161_s25, %s1588_s6  ;;  %p1597_p2 = scmp.lt.s32.totalorder %s1588_s6, %s1588_s6 }
  0x1f   : > { %p1591_p5 = pnand %p1590_p3, %p1589_p0  ;;  %p1598_p10 = por %p1597_p2, %p1596_p9 }
  0x21   : > { %p1592_p7 = pneg %p1591_p5 }
  0x23   : > { %p1599_p1 = pnand %p1598_p10, %p1592_p7 }
  0x25   : > { %1602 = shalt.err (!%p1599_p1)
}
  0x26   : > { %s1705_s7 = smov [#allocation6]   ;;  %p36_p2 = scmp.eq.s32.totalorder %s1703_s18, 0 }
  0x27   : > { %1512 = dma.vmem_to_smem (!%p1804_p11), %s161_s25, 32, %s1705_s7, [#allocation5]  }
  0x28   : > { %s1824_s8 = scalar_select %p1810_p12, %s1699_s17, %s28_s5  }
  0x29   : > { %p3394_p1 = scmp.eq.s32.totalorder %s1770_s19, 1  ;;  %p1522_p0 = scmp.lt.s32.totalorder %s1703_s18, 2 }
  0x2a   : > { %3393 = sst [smem:[#allocation18_spill]] %s1824_s8  ;;  %s171_s10 = sand.u32 1, %s1699_s17  }
  0x2b   : > { %p1832_p9 = por %p3394_p1, %p35_p13  ;;  %p37_p3 = por %p36_p2, %p35_p13 }
  0x2c   : > { %s1378_s11 = sshll.u32 %s171_s10, 3  ;;  %s1492_s12 = sshll.u32 %s1703_s18, 7 }
  0x2d   : > { %s3395_s9 = scalar_select %p1832_p9, 1, 0 }
  0x2e   : > { %s3397_s0 = sld [smem:[#allocation140_spill]]  ;;  %s175_s23 = scalar_lea.vmem [#allocation2], %s1378_s11 }
  0x2f   : > { %3396 = sst [smem:[#allocation19_spill]] %s3395_s9  ;;  %s183_s24 = sshll.u32 %s175_s23, 4  ;;  %s1851_s24 = int_to_ptr.vmem [resolvable:$true] %s183_s24 }
  0x30   : > { %p1847_p11 = pnand %p1522_p0, %p37_p3  ;;  %s172_s28 = scalar_lea.sflag [#allocation3], %s171_s10 }
  0x32   : > { %p1605_p13 = pneg %p1847_p11 }
  0x34   : > { %s1845_s20 = scalar_lea.hbm %s3397_s0, %s1492_s12  ;;  %s1608_s6 = scalar_lea.hbm %s3397_s0, 256 }
  0x35   : > { %s1603_s29 = scalar_lea.hbm %s1845_s20, 128  ;;  %p1609_p10 = scmp.lt.u32.totalorder %s1845_s20, %s3397_s0 }
  0x36   : > { %p1604_p12 = scmp.ne.s32.totalorder %s1845_s20, %s1603_s29  ;;  %p1610_p2 = scmp.lt.u32.totalorder %s1608_s6, %s1603_s29 }
  0x37   : > { %p1612_p0 = scmp.lt.u32.totalorder %s1603_s29, %s1845_s20 }
  0x38   : > { %p1606_p5 = pnand %p1605_p13, %p1604_p12  ;;  %p1611_p1 = por %p1610_p2, %p1609_p10 }
  0x3a   : > { %p1607_p7 = pneg %p1606_p5  ;;  %p1613_p3 = por %p1612_p0, %p1611_p1 }
  0x3c   : > { %p1614_p6 = pnand %p1613_p3, %p1607_p7 }
  0x3e   : > { %1617 = shalt.err (!%p1614_p6)
}
  0x3f   : > { %s1618_s10 = scalar_lea.vmem %s1851_s24, 128  ;;  %s1706_s12 = smov [#allocation2]  }
  0x40   : > { %p1619_p12 = scmp.ne.s32.totalorder %s1851_s24, %s1618_s10  ;;  %s1623_s13 = sshll.u32 %s1706_s12, 4  ;;  %s1624_s13 = int_to_ptr.vmem [resolvable:$false] %s1623_s13 }
  0x41   : > { %s1625_s14 = scalar_lea.vmem %s1624_s13, 256  ;;  %p1626_p4 = scmp.lt.s32.totalorder %s1851_s24, %s1624_s13 }
  0x42   : > { %p1621_p5 = pnand %p1619_p12, %p1605_p13  ;;  %p1627_p10 = scmp.lt.s32.totalorder %s1625_s14, %s1618_s10 }
  0x44   : > { %p1622_p9 = pneg %p1621_p5  ;;  %p1628_p2 = por %p1627_p10, %p1626_p4 }
  0x46   : > { %p1629_p1 = pnand %p1628_p2, %p1622_p9 }
  0x48   : > { %1632 = shalt.err (!%p1629_p1)
}
  0x49   : > { %1516 = dma.hbm_to_vmem [thread:$0]  (!%p1847_p11), %s1845_s20, 128, %s1851_s24, %s172_s28  }
  0x4a   : > { %192 = sbr.rel (%p1792_p8) target bundleno = 1065 (0x429), region = 36 }
  0x51   : > { %s1881_s23 = sand.u32 1, %s1695_s16   ;;  %p3400_p4 = scmp.ne.s32.totalorder %s3385_s21, 0 }
  0x52   : > { %3399 = sst [smem:[#allocation20_spill]] %s1881_s23  ;;  %s3244_s29 = sshll.u32 %s1881_s23, 3 }
  0x53   : > { %s195_s30 = scalar_lea.sflag [#allocation3], %s1881_s23  ;;  %s198_s5 = scalar_lea.vmem [#allocation2], %s3244_s29 }
  0x54   : > { %1678 = dma.done.wait (%p3400_p4), %s195_s30, 128  }
  0x55   : > { %1680 = vsyncadd (%p3400_p4), %s195_s30, 4294967168  ;;  %p3401_p6 = scmp.eq.s32.totalorder %s1770_s19, 0 }
  0x57   : > { %1682 = dma.done.wait (%p3401_p6), [#allocation5], 32   ;;  %p3402_p8 = pmov %p3401_p6 }
  0x59   : > { %1684 = vsyncadd (%p3402_p8), [#allocation5], 4294967264 }
  0x5a   : > { %207 = sfence }
  0x5b   : > { %v228_v0 = vld [vmem:[%s198_s5] sm:$0xff]  ;;  %vm232_vm0 = vcmask 1043456   ;;  %v1707_v5 = vmov 0.0   ;;  %vm1708_vm1 = vmmov 0   ;;  %s3403_s1 = sld [smem:[#allocation141_spill]]  ;;  %vm241_vm2 = vcmask 31744  }
  0x5c   : > { %v230_v1 = vcombine.high %v228_v0, %v228_v0  ;;  %v233_v2 = vsel %vm232_vm0, %v228_v0, 0.0  ;;  %1496 = vmatprep.subr.mxu0 %v1707_v5  ;;  %1498 = vmatprep.mubr.msk.f32.mxu0 %vm1708_vm1, %v1707_v5  ;;  %v1709_v9 = vmov 0   ;;  %s3404_s2 = sld [smem:[#allocation142_spill]]  ;;  %v1710_v18 = vmov 839922192   ;;  %s1711_s25 = smov 127  }
  0x5d   : > { %1574 = vset.pattern.permute.xlu0 %v1709_v9  ;;  %v329_v19 = vunpack.c.l.s4 %v1710_v18  ;;  %v331_v20 = vlaneseq  ;;  %s1712_s28 = smov 3   ;;  %s1713_s6 = smov 126  }
  0x5e   : > { %v234_v3 = vsel %vm232_vm0, %v230_v1, 0.0  ;;  %s1714_s7 = smov 2   ;;  %s1715_s11 = smov 1  }
  0x5f   : > { %v235_v4 = vadd.f32 %v234_v3, %v233_v2  ;;  %v330_v21 = vunpack.c.0.s8 %v329_v19  ;;  %v1905_v22 = vshrl.u32 %v331_v20, 7  ;;  %s1716_s10 = smov 125   ;;  %s1962_s12 = sld [smem:[#allocation6 + $0x3]]  ;;  %v2009_v58 = vand.u32 127, %v331_v20 }
  0x60   : > { %s1964_s13 = sld [smem:[#allocation6 + $0x83]]  ;;  %s1966_s14 = sld [smem:[#allocation6 + $0x8a]] }
  0x61   : > { %236 = vadd.xlane.f32.xlu0 %v235_v4  ;;  %v239_v8 = vld [vmem:[%s3403_s1] sm:$0xf]  ;;  %3405 = vst [vmem:[#allocation21_spill] sm:$0xff] %v1905_v22  ;;  %v333_v23 = vsub.s32 %v330_v21, %v1905_v22  ;;  %s1968_s30 = sld [smem:[#allocation6 + $0xa]]  ;;  %s1970_s5 = sld [smem:[#allocation6 + $0x91]]  ;;  %v2028_v59 = vadd.s32 128, %v2009_v58 }
  0x62   : > { %v240_v10 = vld [vmem:[%s3404_s2] sm:$0xf]  ;;  %s1972_s21 = sld [smem:[#allocation6 + $0x11]]  ;;  %s1974_s26 = sld [smem:[#allocation6 + $0x9f]]  ;;  %v2047_v60 = vand.u32 15, %v2009_v58  ;;  %vm409_vm3 = vcmp.lt.s32.totalorder %v2009_v58, 3 }
  0x63   : > { %s1976_s20 = sld [smem:[#allocation6 + $0x1f]]  ;;  %s1978_s24 = sld [smem:[#allocation6 + $0xa6]]  ;;  %3429 = vst [vmem:[#allocation45_spill] sm:$0xff] %v2028_v59  ;;  %v2050_v61 = vand.u32 15, %v2028_v59  ;;  %vm434_vm6 = vcmp.lt.s32.totalorder %v2009_v58, 2  ;;  %vm459_vm9 = vcmp.lt.s32.totalorder %v2009_v58, 1 }
  0x64   : > { %s1992_s29 = sld [smem:[#allocation6 + $0x87]]  ;;  %s1994_s0 = sld [smem:[#allocation6 + $0x8e]]  ;;  %vm484_vm12 = vcmp.lt.s32.totalorder %v2009_v58, 127  ;;  %vm509_vm15 = vcmp.lt.s32.totalorder %v2009_v58, 126 }
  0x65   : > { %s1996_s1 = sld [smem:[#allocation6 + $0x95]]  ;;  %s1998_s2 = sld [smem:[#allocation6 + $0x9c]]  ;;  %v584_v62 = vstv %s1962_s12 }
  0x66   : > { %s2000_s3 = sld [smem:[#allocation6 + $0xa3]]  ;;  %s2002_s8 = sld [smem:[#allocation6 + $0xaa]]  ;;  %v590_v63 = vstv %s1964_s13  ;;  %v693_v1 = vstv %s1966_s14 }
  0x67   : > { %s2004_s17 = sld [smem:[#allocation6 + $0x81]]  ;;  %s2006_s16 = sld [smem:[#allocation6 + $0x88]]  ;;  %v796_v2 = vstv %s1970_s5 }
  0x68   : > { %s2011_s27 = sld [smem:[#allocation6 + $0x8f]]  ;;  %s2013_s18 = sld [smem:[#allocation6 + $0x96]]  ;;  %v790_v3 = vstv %s1972_s21  ;;  %v985_v5 = vstv %s1974_s26 }
  0x69   : > { %s2015_s22 = sld [smem:[#allocation6 + $0x9d]]  ;;  %s2017_s15 = sld [smem:[#allocation6 + $0xa4]]  ;;  %v979_v4 = vstv %s1976_s20 }
  0x6a   : > { %3413 = sst [smem:[#allocation29_spill]] %s1992_s29  ;;  %s2019_s4 = sld [smem:[#allocation6 + $0xab]]  ;;  %v657_v21 = vstv %s1992_s29 }
  0x6b   : > { %3414 = sst [smem:[#allocation30_spill]] %s1994_s0  ;;  %s2021_s9 = sld [smem:[#allocation6 + $0x82]] }
  0x6c   : > { %3415 = sst [smem:[#allocation31_spill]] %s1996_s1  ;;  %s2023_s23 = sld [smem:[#allocation6 + $0x89]] }
  0x6d   : > { %3416 = sst [smem:[#allocation32_spill]] %s1998_s2  ;;  %s2073_s12 = sld [smem:[#allocation6 + $0x16]] }
  0x6e   : > { %3417 = sst [smem:[#allocation33_spill]] %s2000_s3  ;;  %s2025_s19 = sld [smem:[#allocation6 + $0x90]] }
  0x6f   : > { %3418 = sst [smem:[#allocation34_spill]] %s2002_s8  ;;  %s2087_s13 = sld [smem:[#allocation6 + $0x24]] }
  0x70   : > { %3419 = sst [smem:[#allocation35_spill]] %s2004_s17  ;;  %s2099_s5 = sld [smem:[#allocation6 + $0x9]] }
  0x71   : > { %3420 = sst [smem:[#allocation36_spill]] %s2006_s16  ;;  %s2089_s14 = sld [smem:[#allocation6 + $0x2b]] }
  0x72   : > { %3421 = sst [smem:[#allocation37_spill]] %s2011_s27  ;;  %s2030_s27 = sld [smem:[#allocation6 + $0x97]] }
  0x73   : > { %3422 = sst [smem:[#allocation38_spill]] %s2013_s18  ;;  %s2115_s21 = sld [smem:[#allocation6 + $0x10]] }
  0x74   : > { %3423 = sst [smem:[#allocation39_spill]] %s2015_s22  ;;  %s2032_s18 = sld [smem:[#allocation6 + $0x9e]] }
  0x75   : > { %3424 = sst [smem:[#allocation40_spill]] %s2017_s15  ;;  %s2034_s15 = sld [smem:[#allocation6 + $0xa5]] }
  0x76   : > { %3425 = sst [smem:[#allocation41_spill]] %s2019_s4  ;;  %s2036_s4 = sld [smem:[#allocation6 + $0xac]] }
  0x77   : > { %3426 = sst [smem:[#allocation42_spill]] %s2021_s9  ;;  %s2038_s9 = sld [smem:[#allocation6]] }
  0x78   : > { %3427 = sst [smem:[#allocation43_spill]] %s2023_s23  ;;  %s2040_s23 = sld [smem:[#allocation6 + $0x7]] }
  0x79   : > { %3428 = sst [smem:[#allocation44_spill]] %s2025_s19  ;;  %s2042_s19 = sld [smem:[#allocation6 + $0xe]] }
  0x7a   : > { %3430 = sst [smem:[#allocation46_spill]] %s2030_s27  ;;  %s2117_s26 = sld [smem:[#allocation6 + $0x17]] }
  0x7b   : > { %3431 = sst [smem:[#allocation47_spill]] %s2032_s18  ;;  %s2044_s22 = sld [smem:[#allocation6 + $0x15]] }
  0x7c   : > { %3432 = sst [smem:[#allocation48_spill]] %s2034_s15  ;;  %s2052_s15 = sld [smem:[#allocation6 + $0x1c]] }
  0x7d   : > { %3433 = sst [smem:[#allocation49_spill]] %s2036_s4  ;;  %s2054_s4 = sld [smem:[#allocation6 + $0x23]] }
  0x7e   : > { %3434 = sst [smem:[#allocation50_spill]] %s2038_s9  ;;  %s2067_s9 = sld [smem:[#allocation6 + $0xf]] }
  0x7f   : > { %3435 = sst [smem:[#allocation51_spill]] %s2040_s23  ;;  %s2127_s20 = sld [smem:[#allocation6 + $0x1e]] }
  0x80   : > { %3436 = sst [smem:[#allocation52_spill]] %s2042_s19  ;;  %s2057_s23 = sld [smem:[#allocation6 + $0x2a]] }
  0x81   : > { %3437 = sst [smem:[#allocation53_spill]] %s2044_s22  ;;  %s2059_s19 = sld [smem:[#allocation6 + $0x1]] }
  0x82   : > { %3438 = sst [smem:[#allocation54_spill]] %s2052_s15  ;;  %s2065_s22 = sld [smem:[#allocation6 + $0x8]] }
  0x83   : > { %3439 = sst [smem:[#allocation55_spill]] %s2054_s4  ;;  %s2171_s8 = sld [smem:[#allocation6 + $0x4]] }
  0x84   : > { %3443 = sst [smem:[#allocation59_spill]] %s2067_s9  ;;  %s2173_s3 = sld [smem:[#allocation6 + $0xa0]] }
  0x85   : > { %3444 = sst [smem:[#allocation60_spill]] %s2073_s12  ;;  %s2183_s0 = sld [smem:[#allocation6 + $0x12]] }
  0x86   : > { %3440 = sst [smem:[#allocation56_spill]] %s2057_s23  ;;  %s2075_s23 = sld [smem:[#allocation6 + $0x1d]] }
  0x87   : > { %3441 = sst [smem:[#allocation57_spill]] %s2059_s19  ;;  %s2181_s1 = sld [smem:[#allocation6 + $0xb]] }
  0x88   : > { %3442 = sst [smem:[#allocation58_spill]] %s2065_s22  ;;  %s2235_s2 = sld [smem:[#allocation6 + $0x85]] }
  0x89   : > { %3446 = sst [smem:[#allocation62_spill]] %s2087_s13  ;;  %s2237_s17 = sld [smem:[#allocation6 + $0x8c]] }
  0x8a   : > { %3447 = sst [smem:[#allocation63_spill]] %s2089_s14  ;;  %s2268_s18 = sld [smem:[#allocation6 + $0x13]] }
  0x8b   : > { %3450 = sst [smem:[#allocation66_spill]] %s2099_s5  ;;  %s2274_s16 = sld [smem:[#allocation6 + $0x86]] }
  0x8c   : > { %3445 = sst [smem:[#allocation61_spill]] %s2075_s23  ;;  %s2276_s27 = sld [smem:[#allocation6 + $0xa7]] }
  0x8d   : > { %3455 = sst [smem:[#allocation71_spill]] %s2115_s21  ;;  %s2291_s4 = sld [smem:[#allocation6 + $0x94]] }
  0x8e   : > { %3456 = sst [smem:[#allocation72_spill]] %s2117_s26  ;;  %s2300_s29 = sld [smem:[#allocation6 + $0x21]] }
  0x8f   : > { %3459 = sst [smem:[#allocation75_spill]] %s2127_s20  ;;  %s2302_s23 = sld [smem:[#allocation6 + $0xa1]] }
  0x90   : > { %3472 = sst [smem:[#allocation88_spill]] %s2171_s8  ;;  %s2311_s14 = sld [smem:[#allocation6 + $0xa2]] }
  0x91   : > { %3473 = sst [smem:[#allocation89_spill]] %s2173_s3  ;;  %s2197_s3 = sld [smem:[#allocation6 + $0x19]] }
  0x92   : > { %3477 = sst [smem:[#allocation92_spill]] %s2181_s1  ;;  %s2293_s1 = sld [smem:[#allocation6 + $0xae]] }
  0x93   : > { %3478 = sst [smem:[#allocation93_spill]] %s2183_s0  ;;  %s3516_s9 = sld [smem:[#allocation88_spill]] }
  0x94   : > { %3500 = sst [smem:[#allocation107_spill]] %s2235_s2  ;;  %s2251_s2 = sld [smem:[#allocation6 + $0x6]] }
  0x95   : > { %s2253_s0 = sld [smem:[#allocation6 + $0xc]]  ;;  %3510 = sst [smem:[#allocation111_spill]] %s2276_s27 }
  0x96   : > { %3522 = sst [smem:[#allocation88_spill]] %s2311_s14  ;;  %s2321_s26 = sld [smem:[#allocation6 + $0x28]] }
  0x97   : > { %3485 = sst [smem:[#allocation98_spill]] %s2197_s3  ;;  %s2309_s3 = sld [smem:[#allocation6 + $0x22]] }
  0x98   : > { %3513 = sst [smem:[#allocation112_spill]] %s2293_s1  ;;  %s2323_s15 = sld [smem:[#allocation6 + $0xa8]] }
  0x99   : > { %s2329_s14 = sld [smem:[#allocation6 + $0x29]]  ;;  %s2343_s12 = sld [smem:[#allocation6 + $0xaf]] }
  0x9a   : > { %s2353_s21 = sld [smem:[#allocation6 + $0x30]]  ;;  %s3540_s1 = sld [smem:[#allocation31_spill]] }
  0x9b   : > { %s2355_s5 = sld [smem:[#allocation6 + $0xb0]]  ;;  %s3549_s27 = sld [smem:[#allocation37_spill]] }
  0x9c   : > { %s3541_s20 = sld [smem:[#allocation32_spill]] }
  0xa1   : > { %3534 = sst [smem:[#allocation115_spill]] %s2355_s5  ;;  %s3556_s5 = sld [smem:[#allocation39_spill]] }
  0xee   : > { %v237_v6 = vpop.xlane.xlu0 %236 }
  0xef   : > { %v238_v7 = vmul.f32 0.00390625, %v237_v6  ;;  %v1088_v6 = vstv %s1978_s24  ;;  %s2129_s24 = sld [smem:[#allocation6 + $0x25]] }
  0xf1   : > { %1497 = vmatpush3.msk.msra.mxu0 %vm232_vm0, %v238_v7 }
  0xf2   : > { %1499 = vmatmul.mubr.msk.f32.vlgmr.msra.gmra.mrb[0].mxu0 %vm241_vm2, %v239_v8  ;;  %vm534_vm2 = vcmp.lt.s32.totalorder %v2009_v58, 125 }
  0xf5   : > { %3460 = sst [smem:[#allocation76_spill]] %s2129_s24  ;;  %s2341_s24 = sld [smem:[#allocation6 + $0x2f]] }
 0x1c5   : > { %v314_v11 = vpop.f32.mrb[0].mxu0 }
 0x1c6   : > { %v315_v12 = vadd.f32 %v314_v11, %v240_v10  ;;  %v1500_v13 = vpop.f32.mrb[1].mxu0  ;;  %v2082_v11 = vadd.s32 4294967293, %v2047_v60 }
 0x1c8   : > { %v1387_v14 = vmul.f32 -1.442695, %v315_v12  ;;  %v2085_v12 = vadd.s32 4294967293, %v2050_v61  ;;  %vm399_vm4 = vcmp.ge.s32.totalorder %v2082_v11, 0 }
 0x1ca   : > { %1576 = vpow2.f32 %v1387_v14  ;;  %vm400_vm5 = vcmp.ge.s32.totalorder %v2085_v12, 0 }
 0x1d4   : > { %v1577_v15 = vpop.eup %1576 }
 0x1d5   : > { %v321_v16 = vadd.f32 1.0, %v1577_v15 }
 0x1d7   : > { %1578 = vrcp.f32 %v321_v16 }
 0x1e1   : > { %v1579_v17 = vpop.eup %1578 }
 0x1e2   : > { %326 = vperm.xlu0 %1574, %v1579_v17  }
 0x261   : > { %v327_v24 = vpop.permute.xlu0 %326 }
 0x262   : > { %v334_v25 = vrot.slane %v327_v24, %v333_v23 }
 0x264   : > { %v1908_v26 = vmul.f32 %v334_v25, %v228_v0  ;;  %v687_v0 = vstv %s1968_s30  ;;  %s2097_s30 = sld [smem:[#allocation6 + $0x2]] }
 0x266   : > { %3406 = vst [vmem:[#allocation22_spill] sm:$0xff] %v1908_v26  ;;  %v338_v27 = vcombine.high %v1908_v26, %v1908_v26  ;;  %v340_v28 = vsel %vm232_vm0, %v1908_v26, 0.0  ;;  %v356_v29 = vsel %vm232_vm0, %v1908_v26, -inf }
 0x267   : > { %v341_v30 = vrot.slane %v340_v28, 4  ;;  %v357_v31 = vrot.slane %v356_v29, 4 }
 0x268   : > { %v363_v34 = vsel %vm232_vm0, %v338_v27, -inf  ;;  %v347_v49 = vsel %vm232_vm0, %v338_v27, 0.0 }
 0x269   : > { %v342_v32 = vadd.f32 %v341_v30, %v340_v28  ;;  %v358_v33 = vmax.f32 %v356_v29, %v357_v31  ;;  %v364_v39 = vrot.slane %v363_v34, 4  ;;  %v348_v50 = vrot.slane %v347_v49, 4 }
 0x26a   : > { %3449 = sst [smem:[#allocation65_spill]] %s2097_s30  ;;  %v3547_v30 = vstv %s3540_s1  ;;  %s3559_s1 = sld [smem:[#allocation40_spill]] }
 0x26b   : > { %v343_v35 = vrot.slane %v342_v32, 2  ;;  %v359_v36 = vrot.slane %v358_v33, 2  ;;  %v365_v43 = vmax.f32 %v363_v34, %v364_v39  ;;  %v349_v52 = vadd.f32 %v348_v50, %v347_v49 }
 0x26c   : > { %v2166_v39 = vadd.s32 4294967294, %v2047_v60 }
 0x26d   : > { %v344_v37 = vadd.f32 %v343_v35, %v342_v32  ;;  %v360_v38 = vmax.f32 %v358_v33, %v359_v36  ;;  %v366_v45 = vrot.slane %v365_v43, 2  ;;  %v350_v53 = vrot.slane %v349_v52, 2 }
 0x26e   : > { %vm424_vm7 = vcmp.ge.s32.totalorder %v2166_v39, 0 }
 0x26f   : > { %v361_v40 = vrot.slane %v360_v38, 1  ;;  %v345_v41 = vrot.slane %v344_v37, 1  ;;  %v367_v47 = vmax.f32 %v365_v43, %v366_v45  ;;  %v351_v54 = vadd.f32 %v350_v53, %v349_v52 }
 0x271   : > { %v1917_v42 = vmax.f32 %v360_v38, %v361_v40  ;;  %v346_v44 = vadd.f32 %v345_v41, %v344_v37  ;;  %v368_v48 = vrot.slane %v367_v47, 1  ;;  %v352_v55 = vrot.slane %v351_v54, 1 }
 0x272   : > { %v2169_v40 = vadd.s32 4294967294, %v2050_v61 }
 0x273   : > { %3407 = vst [vmem:[#allocation23_spill] sm:$0xff] %v1917_v42  ;;  %489 = vrot.lane.b32.xlu0 %v1917_v42, %s1711_s25  ;;  %414 = vrot.lane.b32.xlu1 %v1917_v42, %s1712_s28  ;;  %v1926_v46 = vmul.f32 0.25, %v346_v44  ;;  %v1936_v51 = vmax.f32 %v367_v47, %v368_v48  ;;  %v353_v56 = vadd.f32 %v352_v55, %v351_v54  ;;  %v2350_v55 = vadd.s32 3, %v2050_v61 }
 0x274   : > { %v2092_v13 = vmul.f32 %v590_v63, %v1917_v42  ;;  %v2108_v18 = vmul.f32 %v693_v1, %v1917_v42  ;;  %v2111_v19 = vmul.f32 %v796_v2, %v1917_v42  ;;  %v2163_v38 = vmul.f32 %v985_v5, %v1917_v42 }
 0x275   : > { %3408 = vst [vmem:[#allocation24_spill] sm:$0xff] %v1926_v46  ;;  %3409 = vst [vmem:[#allocation25_spill] sm:$0xff] %v1936_v51  ;;  %v1948_v57 = vmul.f32 0.25, %v353_v56  ;;  %v2102_v16 = vmul.f32 %v584_v62, %v1926_v46  ;;  %v2105_v17 = vmul.f32 %v590_v63, %v1936_v51  ;;  %v2120_v23 = vmul.f32 %v687_v0, %v1926_v46 }
 0x276   : > { %3448 = vst [vmem:[#allocation64_spill] sm:$0xff] %v2092_v13  ;;  %3453 = vst [vmem:[#allocation69_spill] sm:$0xff] %v2108_v18  ;;  %v2123_v24 = vmul.f32 %v693_v1, %v1936_v51  ;;  %v2144_v32 = vmul.f32 %v790_v3, %v1926_v46  ;;  %v2157_v36 = vmul.f32 %v796_v2, %v1936_v51  ;;  %v2230_v2 = vadd.s32 4294967295, %v2047_v60 }
 0x277   : > { %514 = vrot.lane.b32.xlu0 %v1917_v42, %s1713_s6  ;;  %439 = vrot.lane.b32.xlu1 %v1917_v42, %s1714_s7  ;;  %3451 = vst [vmem:[#allocation67_spill] sm:$0xff] %v2102_v16  ;;  %3452 = vst [vmem:[#allocation68_spill] sm:$0xff] %v2105_v17  ;;  %v2132_v28 = vmul.f32 %v584_v62, %v1948_v57  ;;  %v2135_v29 = vmul.f32 %v687_v0, %v1948_v57  ;;  %v2314_v62 = vadd.s32 2, %v2047_v60 }
 0x278   : > { %3454 = vst [vmem:[#allocation70_spill] sm:$0xff] %v2111_v19  ;;  %3457 = vst [vmem:[#allocation73_spill] sm:$0xff] %v2120_v23  ;;  %v2147_v33 = vmul.f32 %v790_v3, %v1948_v57  ;;  %v2160_v37 = vmul.f32 %v979_v4, %v1926_v46  ;;  %v2176_v41 = vmul.f32 %v979_v4, %v1948_v57  ;;  %v2233_v3 = vadd.s32 4294967295, %v2050_v61 }
 0x279   : > { %3458 = vst [vmem:[#allocation74_spill] sm:$0xff] %v2123_v24  ;;  %3461 = vst [vmem:[#allocation77_spill] sm:$0xff] %v2132_v28  ;;  %v2179_v43 = vmul.f32 %v985_v5, %v1936_v51  ;;  %v2189_v45 = vmul.f32 %v1088_v6, %v1917_v42  ;;  %v2195_v48 = vmul.f32 %v1088_v6, %v1936_v51  ;;  %v2317_v5 = vadd.s32 2, %v2050_v61 }
 0x27a   : > { %3462 = vst [vmem:[#allocation78_spill] sm:$0xff] %v2135_v29  ;;  %3465 = vst [vmem:[#allocation81_spill] sm:$0xff] %v2144_v32  ;;  %vm425_vm8 = vcmp.ge.s32.totalorder %v2169_v40, 0  ;;  %vm449_vm10 = vcmp.ge.s32.totalorder %v2230_v2, 0  ;;  %vm450_vm11 = vcmp.ge.s32.totalorder %v2233_v3, 0  ;;  %vm501_vm0 = vcmp.lt.s32.totalorder %v2314_v62, 16 }
 0x27b   : > { %464 = vrot.lane.b32.xlu1 %v1917_v42, %s1715_s11  ;;  %480 = vrot.lane.b32.xlu0 %v1926_v46, %s1711_s25  ;;  %3466 = vst [vmem:[#allocation82_spill] sm:$0xff] %v2147_v33  ;;  %3469 = vst [vmem:[#allocation85_spill] sm:$0xff] %v2157_v36  ;;  %vm502_vm1 = vcmp.lt.s32.totalorder %v2317_v5, 16 }
 0x27c   : > { %3470 = vst [vmem:[#allocation86_spill] sm:$0xff] %v2160_v37  ;;  %3471 = vst [vmem:[#allocation87_spill] sm:$0xff] %v2163_v38 }
 0x27d   : > { %3474 = vst [vmem:[#allocation90_spill] sm:$0xff] %v2176_v41  ;;  %3475 = vst [vmem:[#allocation91_spill] sm:$0xff] %v2179_v43 }
 0x27e   : > { %3480 = vst [vmem:[#allocation95_spill] sm:$0xff] %v2189_v45  ;;  %3484 = vst [vmem:[#allocation97_spill] sm:$0xff] %v2195_v48 }
 0x27f   : > { %505 = vrot.lane.b32.xlu0 %v1926_v46, %s1713_s6  ;;  %405 = vrot.lane.b32.xlu1 %v1926_v46, %s1712_s28  ;;  %3532 = vst [vmem:[#allocation114_spill] sm:$0xff] %v2350_v55 }
 0x283   : > { %530 = vrot.lane.b32.xlu0 %v1926_v46, %s1716_s10  ;;  %416 = vrot.lane.b32.xlu1 %v1936_v51, %s1712_s28 }
 0x287   : > { %539 = vrot.lane.b32.xlu0 %v1917_v42, %s1716_s10  ;;  %430 = vrot.lane.b32.xlu1 %v1926_v46, %s1714_s7 }
 0x28b   : > { %441 = vrot.lane.b32.xlu1 %v1936_v51, %s1714_s7 }
 0x28f   : > { %455 = vrot.lane.b32.xlu1 %v1926_v46, %s1715_s11 }
 0x293   : > { %466 = vrot.lane.b32.xlu1 %v1936_v51, %s1715_s11 }
 0x297   : > { %491 = vrot.lane.b32.xlu1 %v1936_v51, %s1711_s25 }
 0x29b   : > { %407 = vrot.lane.b32.xlu1 %v1948_v57, %s1712_s28  ;;  %s1982_s28 = sld [smem:[#allocation6 + $0xad]] }
 0x29f   : > { %432 = vrot.lane.b32.xlu1 %v1948_v57, %s1714_s7  ;;  %s1986_s7 = sld [smem:[#allocation6 + $0x98]] }
 0x2a1   : > { %v1191_v9 = vstv %s1982_s28  ;;  %s2141_s28 = sld [smem:[#allocation6 + $0x84]] }
 0x2a2   : > { %v2205_v50 = vmul.f32 %v1191_v9, %v1917_v42  ;;  %v2211_v53 = vmul.f32 %v1191_v9, %v1936_v51 }
 0x2a3   : > { %457 = vrot.lane.b32.xlu1 %v1948_v57, %s1715_s11  ;;  %s1988_s11 = sld [smem:[#allocation6 + $0x80]] }
 0x2a4   : > { %3488 = vst [vmem:[#allocation101_spill] sm:$0xff] %v2205_v50  ;;  %3492 = vst [vmem:[#allocation103_spill] sm:$0xff] %v2211_v53 }
 0x2a5   : > { %3410 = sst [smem:[#allocation26_spill]] %s1986_s7 }
 0x2a6   : > { %s2154_s7 = sld [smem:[#allocation6 + $0x92]] }
 0x2a7   : > { %516 = vrot.lane.b32.xlu1 %v1936_v51, %s1713_s6  ;;  %3464 = sst [smem:[#allocation80_spill]] %s2141_s28 }
 0x2a8   : > { %s2220_s28 = sld [smem:[#allocation6 + $0x2e]] }
 0x2a9   : > { %3411 = sst [smem:[#allocation27_spill]] %s1988_s11  ;;  %v554_v20 = vstv %s1988_s11  ;;  %s3514_s22 = sld [smem:[#allocation80_spill]] }
 0x2aa   : > { %s2245_s11 = sld [smem:[#allocation6 + $0x93]]  ;;  %3518 = sst [smem:[#allocation80_spill]] %s2302_s23 }
 0x2ab   : > { %482 = vrot.lane.b32.xlu1 %v1948_v57, %s1711_s25  ;;  %s1980_s25 = sld [smem:[#allocation6 + $0x26]] }
 0x2ac   : > { %3468 = sst [smem:[#allocation84_spill]] %s2154_s7  ;;  %s3539_s23 = sld [smem:[#allocation30_spill]] }
 0x2ad   : > { %s2199_s7 = sld [smem:[#allocation6 + $0x20]] }
 0x2ae   : > { %3497 = sst [smem:[#allocation105_spill]] %s2220_s28  ;;  %s2243_s28 = sld [smem:[#allocation6 + $0x5]] }
 0x2af   : > { %507 = vrot.lane.b32.xlu1 %v1948_v57, %s1713_s6  ;;  %s1984_s6 = sld [smem:[#allocation6 + $0x2d]]  ;;  %s3519_s13 = sld [smem:[#allocation84_spill]] }
 0x2b0   : > { %3504 = sst [smem:[#allocation108_spill]] %s2245_s11  ;;  %s3548_s11 = sld [smem:[#allocation36_spill]] }
 0x2b1   : > { %v1082_v7 = vstv %s1980_s25  ;;  %s2139_s25 = sld [smem:[#allocation6 + $0x2c]]  ;;  %3527 = sst [smem:[#allocation84_spill]] %s2323_s15 }
 0x2b2   : > { %v2186_v44 = vmul.f32 %v1082_v7, %v1926_v46  ;;  %v2192_v47 = vmul.f32 %v1082_v7, %v1948_v57  ;;  %v2260_v7 = vadd.s32 1, %v2047_v60  ;;  %s3543_s15 = sld [smem:[#allocation34_spill]] }
 0x2b3   : > { %532 = vrot.lane.b32.xlu1 %v1948_v57, %s1716_s10  ;;  %3486 = sst [smem:[#allocation99_spill]] %s2199_s7  ;;  %s2284_s7 = sld [smem:[#allocation6 + $0x14]] }
 0x2b4   : > { %3479 = vst [vmem:[#allocation94_spill] sm:$0xff] %v2186_v44  ;;  %3482 = vst [vmem:[#allocation96_spill] sm:$0xff] %v2192_v47  ;;  %s3525_s30 = sld [smem:[#allocation99_spill]]  ;;  %vm476_vm13 = vcmp.lt.s32.totalorder %v2260_v7, 16 }
 0x2b5   : > { %v1185_v8 = vstv %s1984_s6  ;;  %s2152_s6 = sld [smem:[#allocation6 + $0x8b]]  ;;  %3508 = vst [vmem:[#allocation109_spill] sm:$0xff] %v2260_v7  ;;  %3530 = sst [smem:[#allocation99_spill]] %s2329_s14 }
 0x2b6   : > { %v2202_v49 = vmul.f32 %v1185_v8, %v1926_v46  ;;  %v2208_v52 = vmul.f32 %v1185_v8, %v1948_v57  ;;  %v2263_v8 = vadd.s32 1, %v2050_v61  ;;  %s3542_s14 = sld [smem:[#allocation33_spill]] }
 0x2b7   : > { %541 = vrot.lane.b32.xlu1 %v1936_v51, %s1716_s10  ;;  %s1990_s10 = sld [smem:[#allocation6 + $0x18]]  ;;  %3463 = sst [smem:[#allocation79_spill]] %s2139_s25 }
 0x2b8   : > { %3487 = vst [vmem:[#allocation100_spill] sm:$0xff] %v2202_v49  ;;  %3490 = vst [vmem:[#allocation102_spill] sm:$0xff] %v2208_v52  ;;  %s2266_s25 = sld [smem:[#allocation6 + $0xd]]  ;;  %vm477_vm14 = vcmp.lt.s32.totalorder %v2263_v8, 16  ;;  %v3557_v51 = vstv %s3543_s15  ;;  %s3567_s15 = sld [smem:[#allocation43_spill]] }
 0x2b9   : > { %3509 = vst [vmem:[#allocation110_spill] sm:$0xff] %v2263_v8 }
 0x2bb   : > { %3467 = sst [smem:[#allocation83_spill]] %s2152_s6 }
 0x2bc   : > { %s2218_s6 = sld [smem:[#allocation6 + $0x27]]  ;;  %v3553_v42 = vstv %s3542_s14  ;;  %s3562_s14 = sld [smem:[#allocation41_spill]] }
 0x2bd   : > { %3412 = sst [smem:[#allocation28_spill]] %s1990_s10  ;;  %v3307_v14 = vstv %s1990_s10  ;;  %s2282_s10 = sld [smem:[#allocation6 + $0x8d]] }
 0x2be   : > { %v2225_v63 = vmul.f32 %v3307_v14, %v1948_v57  ;;  %s3515_s19 = sld [smem:[#allocation83_spill]]  ;;  %v2347_v14 = vadd.s32 3, %v2047_v60  ;;  %v3586_v18 = vstv %s3567_s15  ;;  %s3608_s15 = sld [smem:[#allocation52_spill]] }
 0x2bf   : > { %3521 = sst [smem:[#allocation83_spill]] %s2309_s3  ;;  %s2331_s3 = sld [smem:[#allocation6 + $0xa9]] }
 0x2c0   : > { %3498 = vst [vmem:[#allocation106_spill] sm:$0xff] %v2225_v63  ;;  %3531 = vst [vmem:[#allocation113_spill] sm:$0xff] %v2347_v14 }
 0x2c2   : > { %3496 = sst [smem:[#allocation104_spill]] %s2218_s6 }
 0x2c3   : > { %s3526_s8 = sld [smem:[#allocation104_spill]] }
 0x2c4   : > { %3533 = sst [smem:[#allocation104_spill]] %s2353_s21  ;;  %s3546_s21 = sld [smem:[#allocation35_spill]] }
 0x2c5   : > { %s3535_s6 = sld [smem:[#allocation83_spill]] }
 0x2ca   : > { %v3560_v52 = vstv %s3546_s21  ;;  %s3570_s21 = sld [smem:[#allocation44_spill]] }
 0x2cb   : > { %v3561_v50 = vmov %v3560_v52 }
 0x2e5   : > { %v2095_v15 = vpop.permute.xlu1 %414  ;;  %v490_v41 = vpop.permute.xlu0 %489 }
 0x2e9   : > { %v2149_v34 = vpop.permute.xlu1 %439 }
 0x2ed   : > { %v2213_v54 = vpop.permute.xlu1 %464 }
 0x2f1   : > { %v2255_v10 = vpop.permute.xlu1 %405 }
 0x2f5   : > { %v417_v0 = vpop.permute.xlu1 %416 }
 0x2f6   : > { %v419_v61 = vsel %vm409_vm3, %v417_v0, %v2095_v15  ;;  %v418_v6 = vsel %vm409_vm3, %v2095_v15, %v417_v0  ;;  %v3544_v0 = vstv %s3539_s23  ;;  %s3554_s23 = sld [smem:[#allocation38_spill]] }
 0x2f7   : > { %v420_v15 = vsel %vm399_vm4, %v419_v61, 0.0  ;;  %v421_v57 = vsel %vm400_vm5, %v418_v6, 0.0  ;;  %v3545_v4 = vmov %v3544_v0 }
 0x2f8   : > { %v2403_v1 = vmul.f32 %v554_v20, %v420_v15  ;;  %v2410_v60 = vmul.f32 %v554_v20, %v421_v57  ;;  %v2422_v6 = vmul.f32 %v3544_v0, %v420_v15  ;;  %v2427_v35 = vmul.f32 %v3545_v4, %v421_v57 }
 0x2f9   : > { %v2333_v56 = vpop.permute.xlu1 %430  ;;  %v2431_v20 = vmul.f32 %v3547_v30, %v420_v15  ;;  %v3550_v0 = vmov %v3547_v30  ;;  %v3551_v4 = vstv %s3541_s20  ;;  %s3565_s20 = sld [smem:[#allocation42_spill]] }
 0x2fa   : > { %v2440_v26 = vmul.f32 %v3550_v0, %v421_v57  ;;  %v2444_v22 = vmul.f32 %v3551_v4, %v420_v15  ;;  %v3552_v59 = vmov %v3551_v4  ;;  %v2460_v0 = vmul.f32 %v3557_v51, %v420_v15 }
 0x2fb   : > { %v2448_v30 = vmul.f32 %v3552_v59, %v421_v57 }
 0x2fd   : > { %v442_v31 = vpop.permute.xlu1 %441 }
 0x2fe   : > { %v443_v61 = vsel %vm434_vm6, %v2149_v34, %v442_v31  ;;  %v444_v25 = vsel %vm434_vm6, %v442_v31, %v2149_v34  ;;  %v2414_v31 = vmul.f32 %v657_v21, %v420_v15  ;;  %v2418_v34 = vmul.f32 %v657_v21, %v421_v57 }
 0x2ff   : > { %v445_v9 = vsel %vm424_vm7, %v444_v25, 0.0  ;;  %v446_v21 = vsel %vm425_vm8, %v443_v61, 0.0  ;;  %v2452_v25 = vmul.f32 %v3553_v42, %v420_v15  ;;  %v3555_v61 = vmov %v3553_v42 }
 0x300   : > { %v2456_v46 = vmul.f32 %v3555_v61, %v421_v57  ;;  %v3558_v42 = vmov %v3557_v51  ;;  %v2474_v61 = vmul.f32 %v3560_v52, %v445_v9  ;;  %v2478_v51 = vmul.f32 %v3561_v50, %v446_v21 }
 0x301   : > { %v2397_v27 = vpop.permute.xlu1 %455  ;;  %v2470_v53 = vmul.f32 %v3558_v42, %v421_v57  ;;  %v3563_v15 = vstv %s3548_s11  ;;  %s3573_s11 = sld [smem:[#allocation46_spill]]  ;;  %v3581_v32 = vstv %s3565_s20  ;;  %s3606_s20 = sld [smem:[#allocation51_spill]] }
 0x302   : > { %v2482_v49 = vmul.f32 %v3563_v15, %v445_v9  ;;  %v3564_v48 = vmov %v3563_v15  ;;  %v3569_v15 = vstv %s3554_s23  ;;  %v3583_v29 = vmov %v3581_v32  ;;  %s3592_s23 = sld [smem:[#allocation49_spill]] }
 0x303   : > { %v2486_v47 = vmul.f32 %v3564_v48, %v446_v21  ;;  %v2502_v45 = vmul.f32 %v3569_v15, %v445_v9  ;;  %v3571_v48 = vmov %v3569_v15 }
 0x304   : > { %v2506_v44 = vmul.f32 %v3571_v48, %v446_v21  ;;  %v3578_v48 = vstv %s3562_s14  ;;  %s3601_s14 = sld [smem:[#allocation53_spill]] }
 0x305   : > { %v467_v63 = vpop.permute.xlu1 %466  ;;  %v2526_v33 = vmul.f32 %v3578_v48, %v445_v9 }
 0x306   : > { %v468_v4 = vsel %vm459_vm9, %v2213_v54, %v467_v63  ;;  %v469_v59 = vsel %vm459_vm9, %v467_v63, %v2213_v54  ;;  %v3566_v54 = vstv %s3549_s27  ;;  %s3575_s27 = sld [smem:[#allocation47_spill]] }
 0x307   : > { %v2490_v63 = vmul.f32 %v3566_v54, %v445_v9  ;;  %v470_v52 = vsel %vm449_vm10, %v469_v59, 0.0  ;;  %v471_v50 = vsel %vm450_vm11, %v468_v4, 0.0  ;;  %v3568_v57 = vmov %v3566_v54 }
 0x308   : > { %v2498_v42 = vmul.f32 %v3568_v57, %v446_v21  ;;  %v3572_v54 = vstv %s3556_s5  ;;  %v3576_v57 = vstv %s3559_s1  ;;  %v2534_v24 = vmul.f32 %v3581_v32, %v470_v52  ;;  %s3584_s5 = sld [smem:[#allocation48_spill]]  ;;  %s3596_s1 = sld [smem:[#allocation50_spill]] }
 0x309   : > { %v2510_v43 = vmul.f32 %v3572_v54, %v445_v9  ;;  %v492_v59 = vpop.permute.xlu1 %491  ;;  %v3574_v4 = vmov %v3572_v54  ;;  %v2518_v37 = vmul.f32 %v3576_v57, %v445_v9  ;;  %v3577_v15 = vmov %v3576_v57 }
 0x30a   : > { %v2514_v38 = vmul.f32 %v3574_v4, %v446_v21  ;;  %v2522_v36 = vmul.f32 %v3577_v15, %v446_v21  ;;  %v3579_v54 = vmov %v3578_v48  ;;  %3582 = vst [vmem:[#allocation117_spill] sm:$0xff] %v2534_v24  ;;  %v2538_v4 = vmul.f32 %v3583_v29, %v471_v50 }
 0x30b   : > { %v2530_v19 = vmul.f32 %v3579_v54, %v446_v21  ;;  %v493_v57 = vsel %vm484_vm12, %v490_v41, %v492_v59  ;;  %v2544_v23 = vmul.f32 %v3586_v18, %v470_v52  ;;  %v3588_v15 = vmov %v3586_v18 }
 0x30c   : > { %3585 = vst [vmem:[#allocation118_spill] sm:$0xff] %v2538_v4  ;;  %v2548_v17 = vmul.f32 %v3588_v15, %v471_v50  ;;  %v3590_v9 = vstv %s3570_s21  ;;  %v494_v32 = vsel %vm484_vm12, %v492_v59, %v490_v41  ;;  %v3595_v54 = vstv %s3573_s11  ;;  %s3621_s21 = sld [smem:[#allocation54_spill]]  ;;  %s3631_s11 = sld [smem:[#allocation55_spill]] }
 0x30d   : > { %3580 = vst [vmem:[#allocation116_spill] sm:$0xff] %v2530_v19  ;;  %3587 = vst [vmem:[#allocation119_spill] sm:$0xff] %v2544_v23  ;;  %v2552_v21 = vmul.f32 %v3590_v9, %v470_v52  ;;  %v3593_v48 = vmov %v3590_v9  ;;  %v2562_v13 = vmul.f32 %v3595_v54, %v470_v52  ;;  %v3598_v18 = vmov %v3595_v54  ;;  %v408_v16 = vpop.permute.xlu1 %407 }
 0x30e   : > { %3589 = vst [vmem:[#allocation120_spill] sm:$0xff] %v2548_v17  ;;  %v2558_v29 = vmul.f32 %v3593_v48, %v471_v50  ;;  %v2566_v15 = vmul.f32 %v3598_v18, %v471_v50  ;;  %v3600_v28 = vstv %s3575_s27  ;;  %v2578_v59 = vsel %vm476_vm13, %v493_v57, 0.0  ;;  %s3641_s27 = sld [smem:[#allocation57_spill]] }
 0x30f   : > { %3591 = vst [vmem:[#allocation121_spill] sm:$0xff] %v2552_v21  ;;  %3597 = vst [vmem:[#allocation123_spill] sm:$0xff] %v2562_v13  ;;  %v2570_v9 = vmul.f32 %v3600_v28, %v470_v52  ;;  %v3603_v21 = vmov %v3600_v28  ;;  %v410_v48 = vsel %vm409_vm3, %v2255_v10, %v408_v16  ;;  %v411_v28 = vsel %vm409_vm3, %v408_v16, %v2255_v10 }
 0x310   : > { %3594 = vst [vmem:[#allocation122_spill] sm:$0xff] %v2558_v29  ;;  %3599 = vst [vmem:[#allocation124_spill] sm:$0xff] %v2566_v15  ;;  %v2574_v41 = vmul.f32 %v3603_v21, %v471_v50  ;;  %v3607_v54 = vstv %s3584_s5  ;;  %v2592_v21 = vsel %vm477_vm14, %v494_v32, 0.0  ;;  %v412_v57 = vsel %vm399_vm4, %v411_v28, 0.0  ;;  %s3645_s5 = sld [smem:[#allocation59_spill]] }
 0x311   : > { %3602 = vst [vmem:[#allocation125_spill] sm:$0xff] %v2570_v9  ;;  %3605 = vst [vmem:[#allocation127_spill] sm:$0xff] %v2578_v59  ;;  %v2588_v18 = vmul.f32 %v3607_v54, %v470_v52  ;;  %v3611_v9 = vmov %v3607_v54  ;;  %v3613_v10 = vstv %s3592_s23  ;;  %v3617_v8 = vstv %s3596_s1  ;;  %s3652_s23 = sld [smem:[#allocation61_spill]]  ;;  %s3655_s1 = sld [smem:[#allocation62_spill]] }
 0x312   : > { %3604 = vst [vmem:[#allocation126_spill] sm:$0xff] %v2574_v41  ;;  %3610 = vst [vmem:[#allocation129_spill] sm:$0xff] %v2592_v21  ;;  %v413_v41 = vsel %vm400_vm5, %v410_v48, 0.0  ;;  %v2600_v29 = vmul.f32 %v3611_v9, %v471_v50  ;;  %v2604_v16 = vmul.f32 %v3613_v10, %v470_v52  ;;  %v3615_v54 = vmov %v3613_v10  ;;  %v433_v9 = vpop.permute.xlu1 %432 }
 0x313   : > { %3609 = vst [vmem:[#allocation128_spill] sm:$0xff] %v2588_v18  ;;  %v2608_v18 = vmul.f32 %v3615_v54, %v471_v50  ;;  %v549_v32 = vmul.f32 %v3617_v8, %v412_v57  ;;  %v3618_v7 = vmov %v3617_v8  ;;  %v3619_v28 = vstv %s3601_s14  ;;  %s3658_s14 = sld [smem:[#allocation63_spill]] }
 0x314   : > { %3612 = vst [vmem:[#allocation130_spill] sm:$0xff] %v2600_v29  ;;  %3614 = vst [vmem:[#allocation131_spill] sm:$0xff] %v2604_v16  ;;  %v550_v11 = vmul.f32 %v3618_v7, %v413_v41  ;;  %v858_v12 = vmul.f32 %v3619_v28, %v412_v57  ;;  %v3620_v48 = vmov %v3619_v28  ;;  %v3622_v29 = vstv %s3514_s22  ;;  %s3638_s22 = sld [smem:[#allocation56_spill]] }
 0x315   : > { %3616 = vst [vmem:[#allocation132_spill] sm:$0xff] %v2608_v18  ;;  %v859_v17 = vmul.f32 %v3620_v48, %v413_v41  ;;  %v2621_v52 = vmul.f32 %v3622_v29, %v2578_v59  ;;  %v3624_v10 = vstv %s3606_s20  ;;  %v3626_v16 = vstv %s3608_s15  ;;  %s3668_s20 = sld [smem:[#allocation65_spill]]  ;;  %s3669_s15 = sld [smem:[#allocation66_spill]] }
 0x316   : > { %v652_v50 = vmul.f32 %v3624_v10, %v412_v57  ;;  %v3625_v54 = vmov %v3624_v10  ;;  %v755_v8 = vmul.f32 %v3626_v16, %v412_v57  ;;  %v3627_v23 = vmov %v3622_v29 }
 0x317   : > { %3623 = vst [vmem:[#allocation133_spill] sm:$0xff] %v2621_v52  ;;  %v653_v18 = vmul.f32 %v3625_v54, %v413_v41  ;;  %v2632_v7 = vmul.f32 %v3627_v23, %v2592_v21  ;;  %v3629_v4 = vmov %v3626_v16  ;;  %v866_v48 = vadd.f32 %v2431_v20, %v858_v12 }
 0x318   : > { %v756_v28 = vmul.f32 %v3629_v4, %v413_v41  ;;  %v867_v24 = vadd.f32 %v2440_v26, %v859_v17  ;;  %v3630_v29 = vstv %s3515_s19  ;;  %v557_v10 = vadd.f32 %v2403_v1, %v549_v32  ;;  %s3642_s19 = sld [smem:[#allocation60_spill]] }
 0x319   : > { %3628 = vst [vmem:[#allocation134_spill] sm:$0xff] %v2632_v7  ;;  %v2641_v52 = vmul.f32 %v3630_v29, %v2578_v59  ;;  %v3633_v16 = vmov %v3630_v29  ;;  %v3635_v23 = vstv %s3519_s13  ;;  %v558_v17 = vadd.f32 %v2410_v60, %v550_v11  ;;  %s3643_s13 = sld [smem:[#allocation58_spill]] }
 0x31a   : > { %v2647_v54 = vmul.f32 %v3633_v16, %v2592_v21  ;;  %v2652_v4 = vmul.f32 %v3635_v23, %v2578_v59  ;;  %v3637_v20 = vmov %v3635_v23  ;;  %v3640_v12 = vstv %s3621_s21  ;;  %v458_v16 = vpop.permute.xlu1 %457  ;;  %s3670_s21 = sld [smem:[#allocation72_spill]] }
 0x31b   : > { %3632 = vst [vmem:[#allocation135_spill] sm:$0xff] %v2641_v52  ;;  %v2657_v26 = vmul.f32 %v3637_v20, %v2592_v21  ;;  %v944_v1 = vmul.f32 %v3640_v12, %v412_v57  ;;  %v435_v32 = vsel %vm434_vm6, %v2333_v56, %v433_v9  ;;  %v436_v29 = vsel %vm434_vm6, %v433_v9, %v2333_v56 }
 0x31c   : > { %3634 = vst [vmem:[#allocation136_spill] sm:$0xff] %v2647_v54  ;;  %3636 = vst [vmem:[#allocation137_spill] sm:$0xff] %v2652_v4  ;;  %v660_v23 = vadd.f32 %v2414_v31, %v652_v50  ;;  %v661_v20 = vadd.f32 %v2418_v34, %v653_v18  ;;  %v763_v60 = vadd.f32 %v2422_v6, %v755_v8  ;;  %v3644_v11 = vmov %v3640_v12 }
 0x31d   : > { %3639 = vst [vmem:[#allocation138_spill] sm:$0xff] %v2657_v26  ;;  %v945_v12 = vmul.f32 %v3644_v11, %v413_v41  ;;  %v764_v21 = vadd.f32 %v2427_v35, %v756_v28  ;;  %v3646_v59 = vstv %s3631_s11  ;;  %v437_v56 = vsel %vm424_vm7, %v436_v29, 0.0  ;;  %s3671_s11 = sld [smem:[#allocation71_spill]] }
 0x31e   : > { %v1047_v26 = vmul.f32 %v3646_v59, %v412_v57  ;;  %v438_v31 = vsel %vm425_vm8, %v435_v32, 0.0  ;;  %v3647_v9 = vmov %v3646_v59  ;;  %v3648_v18 = vstv %s3638_s22  ;;  %s3678_s22 = sld [smem:[#allocation75_spill]] }
 0x31f   : > { %v1048_v34 = vmul.f32 %v3647_v9, %v413_v41  ;;  %v1150_v50 = vmul.f32 %v3648_v18, %v412_v57  ;;  %v3649_v6 = vmov %v3648_v18  ;;  %v3650_v4 = vstv %s3641_s27  ;;  %s3681_s27 = sld [smem:[#allocation76_spill]] }
 0x320   : > { %v1151_v8 = vmul.f32 %v3649_v6, %v413_v41  ;;  %v561_v11 = vmul.f32 %v3650_v4, %v437_v56  ;;  %v952_v54 = vadd.f32 %v2444_v22, %v944_v1  ;;  %v3651_v35 = vmov %v3650_v4  ;;  %v2702_v22 = vpop.permute.xlu1 %516 }
 0x321   : > { %v562_v59 = vmul.f32 %v3651_v35, %v438_v31  ;;  %v3653_v28 = vstv %s3642_s19  ;;  %v953_v32 = vadd.f32 %v2448_v30, %v945_v12  ;;  %v3656_v9 = vstv %s3643_s13  ;;  %3660 = vst [vmem:[#allocation139_spill] sm:$0xff] %v2702_v22  ;;  %s3683_s19 = sld [smem:[#allocation79_spill]]  ;;  %s3699_s13 = sld [smem:[#allocation92_spill]] }
 0x322   : > { %v870_v39 = vmul.f32 %v3653_v28, %v437_v56  ;;  %v3654_v29 = vmov %v3653_v28  ;;  %v664_v57 = vmul.f32 %v3656_v9, %v437_v56  ;;  %v3657_v18 = vmov %v3656_v9 }
 0x323   : > { %v871_v40 = vmul.f32 %v3654_v29, %v438_v31  ;;  %v665_v41 = vmul.f32 %v3657_v18, %v438_v31  ;;  %v3659_v4 = vstv %s3645_s5  ;;  %v563_v1 = vadd.f32 %v561_v11, %v557_v10  ;;  %v515_v29 = vpop.permute.xlu0 %514  ;;  %s3703_s5 = sld [smem:[#allocation93_spill]] }
 0x324   : > { %v767_v6 = vmul.f32 %v3659_v4, %v437_v56  ;;  %v3661_v35 = vmov %v3659_v4  ;;  %v872_v28 = vadd.f32 %v870_v39, %v866_v48  ;;  %v1055_v55 = vadd.f32 %v2452_v25, %v1047_v26 }
 0x325   : > { %v768_v52 = vmul.f32 %v3661_v35, %v438_v31  ;;  %v873_v7 = vadd.f32 %v871_v40, %v867_v24  ;;  %v1056_v30 = vadd.f32 %v2456_v46, %v1048_v34  ;;  %v3662_v12 = vstv %s3652_s23  ;;  %s3808_s23 = sld [smem:[#allocation104_spill]] }
 0x326   : > { %v956_v9 = vmul.f32 %v3662_v12, %v437_v56  ;;  %v3663_v14 = vmov %v3662_v12  ;;  %v564_v18 = vadd.f32 %v562_v59, %v558_v17  ;;  %v3664_v13 = vstv %s3655_s1  ;;  %v483_v59 = vpop.permute.xlu1 %482  ;;  %s3812_s1 = sld [smem:[#allocation26_spill]] }
 0x327   : > { %v957_v15 = vmul.f32 %v3663_v14, %v438_v31  ;;  %v1059_v4 = vmul.f32 %v3664_v13, %v437_v56  ;;  %v3665_v19 = vmov %v3664_v13  ;;  %v3666_v10 = vstv %s3658_s14  ;;  %s3813_s14 = sld [smem:[#allocation28_spill]] }
 0x328   : > { %v1060_v22 = vmul.f32 %v3665_v19, %v438_v31  ;;  %v1162_v11 = vmul.f32 %v3666_v10, %v437_v56  ;;  %v1158_v24 = vadd.f32 %v2460_v0, %v1150_v50  ;;  %v1159_v48 = vadd.f32 %v2470_v53, %v1151_v8 }
 0x329   : > { %v666_v25 = vadd.f32 %v664_v57, %v660_v23  ;;  %v3667_v26 = vmov %v3666_v10  ;;  %v667_v34 = vadd.f32 %v665_v41, %v661_v20  ;;  %v769_v39 = vadd.f32 %v767_v6, %v763_v60  ;;  %v481_v20 = vpop.permute.xlu0 %480 }
 0x32a   : > { %v1163_v46 = vmul.f32 %v3667_v26, %v438_v31  ;;  %v770_v40 = vadd.f32 %v768_v52, %v764_v21  ;;  %v569_v14 = vadd.f32 %v2474_v61, %v563_v1  ;;  %v958_v17 = vadd.f32 %v956_v9, %v952_v54  ;;  %v508_v41 = vpop.permute.xlu1 %507  ;;  %v3686_v26 = vld [vmem:[#allocation124_spill] sm:$0xff] }
 0x32b   : > { %v959_v13 = vadd.f32 %v957_v15, %v953_v32  ;;  %v878_v19 = vadd.f32 %v2502_v45, %v872_v28  ;;  %v879_v56 = vadd.f32 %v2506_v44, %v873_v7  ;;  %v1061_v35 = vadd.f32 %v1059_v4, %v1055_v55  ;;  %v3677_v32 = vld [vmem:[#allocation116_spill] sm:$0xff]  ;;  %v3684_v4 = vld [vmem:[#allocation139_spill] sm:$0xff] }
 0x32c   : > { %v1062_v0 = vadd.f32 %v1060_v22, %v1056_v30  ;;  %v1164_v53 = vadd.f32 %v1162_v11, %v1158_v24  ;;  %v570_v23 = vadd.f32 %v2478_v51, %v564_v18  ;;  %v1165_v21 = vadd.f32 %v1163_v46, %v1159_v48  ;;  %v3685_v48 = vld [vmem:[#allocation123_spill] sm:$0xff] }
 0x32d   : > { %v672_v61 = vadd.f32 %v2482_v49, %v666_v25  ;;  %v460_v45 = vsel %vm459_vm9, %v2397_v27, %v458_v16  ;;  %v461_v44 = vsel %vm459_vm9, %v458_v16, %v2397_v27  ;;  %v673_v55 = vadd.f32 %v2486_v47, %v667_v34  ;;  %v506_v9 = vpop.permute.xlu0 %505 }
 0x32e   : > { %v775_v15 = vadd.f32 %v2490_v63, %v769_v39  ;;  %v462_v51 = vsel %vm449_vm10, %v461_v44, 0.0  ;;  %v463_v52 = vsel %vm450_vm11, %v460_v45, 0.0  ;;  %v776_v49 = vadd.f32 %v2498_v42, %v770_v40 }
 0x32f   : > { %v964_v7 = vadd.f32 %v2510_v43, %v958_v17  ;;  %v965_v54 = vadd.f32 %v2514_v38, %v959_v13  ;;  %v3672_v60 = vstv %s3668_s20  ;;  %v3674_v31 = vstv %s3669_s15  ;;  %s3814_s20 = sld [smem:[#allocation98_spill]] }
 0x330   : > { %v573_v27 = vmul.f32 %v3672_v60, %v462_v51  ;;  %v3673_v16 = vmov %v3672_v60  ;;  %v676_v63 = vmul.f32 %v3674_v31, %v462_v51  ;;  %v3675_v50 = vstv %s3670_s21  ;;  %s3817_s15 = sld [smem:[#allocation115_spill]]  ;;  %s3115_s21 = sld [smem:[#allocation6 + $0x1b]] }
 0x331   : > { %v574_v47 = vmul.f32 %v3673_v16, %v463_v52  ;;  %v882_v2 = vmul.f32 %v3675_v50, %v462_v51  ;;  %v3676_v8 = vmov %v3675_v50  ;;  %v1067_v42 = vadd.f32 %v2518_v37, %v1061_v35  ;;  %v3691_v35 = vld [vmem:[#allocation113_spill] sm:$0xff]  ;;  %v3694_v16 = vld [vmem:[#allocation114_spill] sm:$0xff] }
 0x332   : > { %v883_v3 = vmul.f32 %v3676_v8, %v463_v52  ;;  %v1068_v43 = vadd.f32 %v2522_v36, %v1062_v0  ;;  %v1170_v38 = vadd.f32 %v2526_v33, %v1164_v53  ;;  %v1171_v57 = vadd.f32 %v3677_v32, %v1165_v21  ;;  %v3696_v8 = vld [vmem:[#allocation118_spill] sm:$0xff] }
 0x333   : > { %v3679_v6 = vmov %v3674_v31  ;;  %v3680_v1 = vstv %s3671_s11  ;;  %v884_v30 = vadd.f32 %v882_v2, %v878_v19  ;;  %v575_v18 = vadd.f32 %v573_v27, %v569_v14  ;;  %v3695_v2 = vld [vmem:[#allocation117_spill] sm:$0xff]  ;;  %s1721_s11 = smov 96  }
 0x334   : > { %v677_v22 = vmul.f32 %v3679_v6, %v463_v52  ;;  %v779_v28 = vmul.f32 %v3680_v1, %v462_v51  ;;  %v885_v12 = vadd.f32 %v883_v3, %v879_v56  ;;  %v3682_v37 = vmov %v3680_v1  ;;  %v3698_v3 = vld [vmem:[#allocation120_spill] sm:$0xff] }
 0x335   : > { %v780_v36 = vmul.f32 %v3682_v37, %v463_v52  ;;  %v518_v33 = vsel %vm509_vm15, %v515_v29, %v3684_v4  ;;  %v519_v10 = vsel %vm509_vm15, %v3684_v4, %v515_v29  ;;  %v576_v11 = vadd.f32 %v574_v47, %v570_v23  ;;  %v533_v47 = vpop.permute.xlu1 %532 }
 0x336   : > { %v678_v24 = vadd.f32 %v676_v63, %v672_v61  ;;  %v2772_v25 = vadd.f32 %v3685_v48, %v884_v30  ;;  %v2775_v46 = vadd.f32 %v3686_v26, %v885_v12  ;;  %v3687_v34 = vstv %s3678_s22  ;;  %v3709_v48 = vld [vmem:[#allocation131_spill] sm:$0xff]  ;;  %s3834_s22 = sld [smem:[#allocation15_spill]] }
 0x337   : > { %v968_v39 = vmul.f32 %v3687_v34, %v462_v51  ;;  %v3688_v40 = vmov %v3687_v34  ;;  %v3689_v17 = vstv %s3681_s27  ;;  %vm526_vm3 = vcmp.lt.s32.totalorder %v3691_v35, 16  ;;  %v3722_v35 = vld [vmem:[#allocation77_spill] sm:$0xff]  ;;  %s3835_s27 = sld [smem:[#allocation20_spill]] }
 0x338   : > { %v969_v14 = vmul.f32 %v3688_v40, %v463_v52  ;;  %v1071_v13 = vmul.f32 %v3689_v17, %v462_v51  ;;  %v3690_v19 = vmov %v3689_v17  ;;  %v679_v29 = vadd.f32 %v677_v22, %v673_v55  ;;  %v3704_v22 = vld [vmem:[#allocation122_spill] sm:$0xff] }
 0x339   : > { %v1072_v56 = vmul.f32 %v3690_v19, %v463_v52  ;;  %v781_v0 = vadd.f32 %v779_v28, %v775_v15  ;;  %v3692_v53 = vstv %s3683_s19  ;;  %v782_v45 = vadd.f32 %v780_v36, %v776_v49  ;;  %v531_v15 = vpop.permute.xlu0 %530  ;;  %v3697_v49 = vld [vmem:[#allocation119_spill] sm:$0xff]  ;;  %v3705_v28 = vld [vmem:[#allocation125_spill] sm:$0xff]  ;;  %v3707_v36 = vld [vmem:[#allocation128_spill] sm:$0xff]  ;;  %v542_v19 = vpop.permute.xlu1 %541  ;;  %s3837_s19 = sld [smem:[#allocation19_spill]] }
 0x33a   : > { %v1174_v23 = vmul.f32 %v3692_v53, %v462_v51  ;;  %v3693_v21 = vmov %v3692_v53  ;;  %v970_v44 = vadd.f32 %v968_v39, %v964_v7  ;;  %v971_v60 = vadd.f32 %v969_v14, %v965_v54 }
 0x33b   : > { %v1175_v61 = vmul.f32 %v3693_v21, %v463_v52  ;;  %v1073_v27 = vadd.f32 %v1071_v13, %v1067_v42  ;;  %vm527_vm4 = vcmp.lt.s32.totalorder %v3694_v16, 16  ;;  %v1074_v31 = vadd.f32 %v1072_v56, %v1068_v43  ;;  %v3700_v43 = vld [vmem:[#allocation121_spill] sm:$0xff] }
 0x33c   : > { %v1176_v63 = vadd.f32 %v1174_v23, %v1170_v38  ;;  %v485_v50 = vsel %vm484_vm12, %v481_v20, %v483_v59  ;;  %v486_v55 = vsel %vm484_vm12, %v483_v59, %v481_v20  ;;  %v581_v51 = vadd.f32 %v3695_v2, %v575_v18  ;;  %v3706_v18 = vld [vmem:[#allocation126_spill] sm:$0xff]  ;;  %v3723_v59 = vld [vmem:[#allocation64_spill] sm:$0xff] }
 0x33d   : > { %v582_v52 = vadd.f32 %v3696_v8, %v576_v11  ;;  %v684_v7 = vadd.f32 %v3697_v49, %v678_v24  ;;  %v1177_v54 = vadd.f32 %v1175_v61, %v1171_v57  ;;  %v685_v42 = vadd.f32 %v3698_v3, %v679_v29  ;;  %v3708_v11 = vld [vmem:[#allocation130_spill] sm:$0xff]  ;;  %v540_v61 = vpop.permute.xlu0 %539  ;;  %v3720_v8 = vld [vmem:[#allocation67_spill] sm:$0xff] }
 0x33e   : > { %v787_v38 = vadd.f32 %v3700_v43, %v781_v0  ;;  %v2803_v6 = vsel %vm476_vm13, %v485_v50, 0.0  ;;  %v2807_v20 = vsel %vm477_vm14, %v486_v55, 0.0  ;;  %v2810_v1 = vadd.f32 %v3704_v22, %v782_v45 }
 0x33f   : > { %v2813_v57 = vadd.f32 %v3705_v28, %v970_v44  ;;  %v2817_v30 = vsel %vm501_vm0, %v518_v33, 0.0  ;;  %v2821_v12 = vsel %vm502_vm1, %v519_v10, 0.0  ;;  %v2824_v37 = vadd.f32 %v3706_v18, %v971_v60  ;;  %v3710_v33 = vld [vmem:[#allocation132_spill] sm:$0xff]  ;;  %p3842_p11 = scmp.ne.s32.totalorder %s3837_s19, 0 }
 0x340   : > { %v2827_v4 = vadd.f32 %v3707_v36, %v1073_v27  ;;  %v2830_v24 = vadd.f32 %v3708_v11, %v1074_v31  ;;  %v2833_v26 = vadd.f32 %v3709_v48, %v1176_v63  ;;  %v2836_v34 = vadd.f32 %v3710_v33, %v1177_v54 }
 0x341   : > { %v3711_v39 = vstv %s3516_s9  ;;  %v3713_v17 = vstv %s3699_s13  ;;  %v3715_v0 = vstv %s3703_s5  ;;  %v510_v23 = vsel %vm509_vm15, %v506_v9, %v508_v41  ;;  %s3718_s9 = sld [smem:[#allocation107_spill]]  ;;  %s1493_s13 = sshll.u32 %s3834_s22, 7 }
 0x342   : > { %v597_v10 = vmul.f32 %v3711_v39, %v2803_v6  ;;  %v3712_v40 = vmov %v3711_v39  ;;  %v700_v13 = vmul.f32 %v3713_v17, %v2803_v6  ;;  %v3714_v56 = vmov %v3713_v17  ;;  %v3728_v39 = vld [vmem:[#allocation68_spill] sm:$0xff]  ;;  %s3838_s5 = sshll.u32 %s3835_s27, 3 }
 0x343   : > { %v598_v14 = vmul.f32 %v3712_v40, %v2807_v20  ;;  %v701_v29 = vmul.f32 %v3714_v56, %v2807_v20  ;;  %v803_v53 = vmul.f32 %v3715_v0, %v2803_v6  ;;  %v511_v21 = vsel %vm509_vm15, %v508_v41, %v506_v9 }
 0x344   : > { %v3716_v45 = vmov %v3715_v0  ;;  %v3717_v60 = vstv %s3525_s30  ;;  %v535_v31 = vsel %vm534_vm2, %v531_v15, %v533_v47  ;;  %v536_v63 = vsel %vm534_vm2, %v533_v47, %v531_v15  ;;  %s3786_s30 = sld [smem:[#allocation84_spill]] }
 0x345   : > { %v2860_v44 = vmul.f32 %v3716_v45, %v2807_v20  ;;  %v2865_v27 = vmul.f32 %v3717_v60, %v2803_v6  ;;  %v2873_v41 = vsel %vm501_vm0, %v510_v23, 0.0  ;;  %v2877_v9 = vsel %vm526_vm3, %v535_v31, 0.0 }
 0x346   : > { %v543_v50 = vsel %vm534_vm2, %v540_v61, %v542_v19  ;;  %v544_v55 = vsel %vm534_vm2, %v542_v19, %v540_v61  ;;  %v3719_v2 = vmov %v3717_v60  ;;  %v2890_v62 = vsel %vm502_vm1, %v511_v21, 0.0  ;;  %v3730_v19 = vld [vmem:[#allocation73_spill] sm:$0xff] }
 0x347   : > { %v2886_v47 = vmul.f32 %v3719_v2, %v2807_v20  ;;  %v2894_v15 = vsel %vm526_vm3, %v543_v50, 0.0  ;;  %v587_v49 = vadd.f32 %v3720_v8, %v581_v51  ;;  %v3721_v54 = vstv %s3526_s8  ;;  %v3734_v50 = vld [vmem:[#allocation69_spill] sm:$0xff] }
 0x348   : > { %v2900_v3 = vmul.f32 %v3721_v54, %v2803_v6  ;;  %v2904_v43 = vsel %vm527_vm4, %v536_v63, 0.0  ;;  %v2908_v5 = vsel %vm527_vm4, %v544_v55, 0.0  ;;  %v588_v32 = vadd.f32 %v3722_v35, %v582_v52 }
 0x349   : > { %v593_v22 = vadd.f32 %v3723_v59, %v587_v49  ;;  %v3724_v51 = vstv %s2243_s28  ;;  %v3725_v18 = vstv %s3718_s9  ;;  %v3726_v11 = vstv %s2251_s2  ;;  %v3737_v49 = vld [vmem:[#allocation133_spill] sm:$0xff]  ;;  %s3746_s2 = sld [smem:[#allocation108_spill]]  ;;  %s1720_s28 = smov 112  }
 0x34a   : > { %v609_v28 = vmul.f32 %v3724_v51, %v2873_v41  ;;  %v615_v36 = vmul.f32 %v3725_v18, %v2817_v30  ;;  %v621_v48 = vmul.f32 %v3726_v11, %v2877_v9  ;;  %v3727_v16 = vstv %s2274_s16  ;;  %s1717_s16 = smov 48   ;;  %s227_s9 = scalar_lea.vmem [#allocation7], %s3838_s5 }
 0x34b   : > { %v627_v33 = vmul.f32 %v3727_v16, %v2894_v15  ;;  %v594_v40 = vadd.f32 %v3728_v39, %v588_v32  ;;  %v3729_v52 = vmov %v3724_v51  ;;  %v690_v56 = vadd.f32 %v3730_v19, %v684_v7  ;;  %v3736_v7 = vld [vmem:[#allocation78_spill] sm:$0xff]  ;;  %v3742_v39 = vld [vmem:[#allocation74_spill] sm:$0xff] }
 0x34c   : > { %v610_v17 = vmul.f32 %v3729_v52, %v2890_v62  ;;  %v599_v0 = vadd.f32 %v597_v10, %v593_v22  ;;  %v3731_v23 = vmov %v3725_v18  ;;  %v3732_v61 = vmov %v3726_v11  ;;  %v3741_v18 = vld [vmem:[#allocation134_spill] sm:$0xff]  ;;  %v3743_v52 = vld [vmem:[#allocation81_spill] sm:$0xff] }
 0x34d   : > { %v616_v21 = vmul.f32 %v3731_v23, %v2821_v12  ;;  %v622_v45 = vmul.f32 %v3732_v61, %v2904_v43  ;;  %v3733_v60 = vmov %v3727_v16  ;;  %v600_v63 = vadd.f32 %v598_v14, %v594_v40 }
 0x34e   : > { %v628_v31 = vmul.f32 %v3733_v60, %v2908_v5  ;;  %v696_v55 = vadd.f32 %v3734_v50, %v690_v56  ;;  %v3735_v2 = vstv %s2253_s0  ;;  %v691_v10 = vadd.f32 %v3736_v7, %v685_v42  ;;  %v3748_v7 = vld [vmem:[#allocation135_spill] sm:$0xff]  ;;  %s3760_s0 = sld [smem:[#allocation89_spill]] }
 0x34f   : > { %v712_v8 = vmul.f32 %v3735_v2, %v2873_v41  ;;  %v605_v54 = vadd.f32 %v3737_v49, %v599_v0  ;;  %v3738_v35 = vstv %s2237_s17  ;;  %v3739_v59 = vstv %s2266_s25  ;;  %s3762_s17 = sld [smem:[#allocation105_spill]]  ;;  %s3789_s25 = sld [smem:[#allocation99_spill]] }
 0x350   : > { %v718_v32 = vmul.f32 %v3738_v35, %v2817_v30  ;;  %v724_v22 = vmul.f32 %v3739_v59, %v2877_v9  ;;  %v3740_v51 = vstv %s2282_s10  ;;  %v606_v11 = vadd.f32 %v3741_v18, %v600_v63  ;;  %s1718_s10 = smov 32  }
 0x351   : > { %v730_v14 = vmul.f32 %v3740_v51, %v2894_v15  ;;  %v702_v16 = vadd.f32 %v700_v13, %v696_v55  ;;  %v697_v40 = vadd.f32 %v3742_v39, %v691_v10  ;;  %v793_v42 = vadd.f32 %v3743_v52, %v787_v38  ;;  %v3749_v55 = vld [vmem:[#allocation70_spill] sm:$0xff]  ;;  %v3753_v52 = vld [vmem:[#allocation136_spill] sm:$0xff] }
 0x352   : > { %v611_v19 = vadd.f32 %v609_v28, %v605_v54  ;;  %v3744_v56 = vmov %v3735_v2  ;;  %v3745_v23 = vmov %v3738_v35  ;;  %v3747_v60 = vmov %v3739_v59  ;;  %v3752_v59 = vld [vmem:[#allocation82_spill] sm:$0xff] }
 0x353   : > { %v713_v0 = vmul.f32 %v3744_v56, %v2890_v62  ;;  %v719_v61 = vmul.f32 %v3745_v23, %v2821_v12  ;;  %v725_v50 = vmul.f32 %v3747_v60, %v2904_v43  ;;  %v612_v2 = vadd.f32 %v610_v17, %v606_v11 }
 0x354   : > { %v708_v63 = vadd.f32 %v3748_v7, %v702_v16  ;;  %v703_v13 = vadd.f32 %v701_v29, %v697_v40  ;;  %v799_v10 = vadd.f32 %v3749_v55, %v793_v42  ;;  %v617_v49 = vadd.f32 %v615_v36, %v611_v19  ;;  %v3756_v19 = vld [vmem:[#allocation85_spill] sm:$0xff] }
 0x355   : > { %v3750_v38 = vmov %v3740_v51  ;;  %v3751_v54 = vstv %s2268_s18  ;;  %v794_v51 = vadd.f32 %v3752_v59, %v2810_v1  ;;  %v618_v18 = vadd.f32 %v616_v21, %v612_v2  ;;  %v3757_v1 = vld [vmem:[#allocation137_spill] sm:$0xff]  ;;  %v3765_v59 = vld [vmem:[#allocation87_spill] sm:$0xff]  ;;  %s3769_s18 = sld [smem:[#allocation80_spill]] }
 0x356   : > { %v731_v28 = vmul.f32 %v3750_v38, %v2908_v5  ;;  %v815_v35 = vmul.f32 %v3751_v54, %v2873_v41  ;;  %v714_v39 = vadd.f32 %v712_v8, %v708_v63  ;;  %v709_v17 = vadd.f32 %v3753_v52, %v703_v13  ;;  %v3759_v63 = vld [vmem:[#allocation86_spill] sm:$0xff] }
 0x357   : > { %v805_v11 = vadd.f32 %v803_v53, %v799_v10  ;;  %v623_v29 = vadd.f32 %v621_v48, %v617_v49  ;;  %v3754_v16 = vstv %s3746_s2  ;;  %v3755_v40 = vstv %s2284_s7  ;;  %s3774_s7 = sld [smem:[#allocation88_spill]]  ;;  %s1292_s2 = sshll.u32 %s227_s9, 4  ;;  %s3194_s2 = int_to_ptr.vmem [resolvable:$true] %s1292_s2 }
 0x358   : > { %v821_v36 = vmul.f32 %v3754_v16, %v2817_v30  ;;  %v827_v42 = vmul.f32 %v3755_v40, %v2877_v9  ;;  %v800_v56 = vadd.f32 %v3756_v19, %v794_v51  ;;  %v624_v23 = vadd.f32 %v622_v45, %v618_v18  ;;  %v3767_v18 = vld [vmem:[#allocation127_spill] sm:$0xff] }
 0x359   : > { %v720_v60 = vadd.f32 %v718_v32, %v714_v39  ;;  %v715_v7 = vadd.f32 %v713_v0, %v709_v17  ;;  %v811_v21 = vadd.f32 %v3757_v1, %v805_v11  ;;  %v629_v8 = vadd.f32 %v627_v33, %v623_v29  ;;  %v3763_v33 = vld [vmem:[#allocation138_spill] sm:$0xff] }
 0x35a   : > { %v806_v2 = vadd.f32 %v2860_v44, %v800_v56  ;;  %v3758_v53 = vmov %v3751_v54  ;;  %v982_v13 = vadd.f32 %v3759_v63, %v2813_v57  ;;  %v630_v55 = vadd.f32 %v628_v31, %v624_v23  ;;  %v3773_v23 = vld [vmem:[#allocation90_spill] sm:$0xff]  ;;  %v3779_v63 = vld [vmem:[#allocation91_spill] sm:$0xff] }
 0x35b   : > { %v816_v48 = vmul.f32 %v3758_v53, %v2890_v62  ;;  %v721_v10 = vadd.f32 %v719_v61, %v715_v7  ;;  %v817_v49 = vadd.f32 %v815_v35, %v811_v21  ;;  %v3761_v45 = vstv %s2291_s4  ;;  %631 = vrot.lane.b32.xlu0 %v629_v8, %s1717_s16  ;;  %s3784_s4 = sld [smem:[#allocation111_spill]] }
 0x35c   : > { %v833_v32 = vmul.f32 %v3761_v45, %v2894_v15  ;;  %v726_v44 = vadd.f32 %v724_v22, %v720_v60  ;;  %v812_v0 = vadd.f32 %v3763_v33, %v806_v2  ;;  %v3764_v38 = vmov %v3754_v16  ;;  %633 = vrot.lane.b32.xlu1 %v630_v55, %s1717_s16 }
 0x35d   : > { %v822_v54 = vmul.f32 %v3764_v38, %v2821_v12  ;;  %v988_v51 = vadd.f32 %v3765_v59, %v982_v13  ;;  %v727_v57 = vadd.f32 %v725_v50, %v721_v10  ;;  %v823_v31 = vadd.f32 %v821_v36, %v817_v49  ;;  %v3780_v49 = vld [vmem:[#allocation94_spill] sm:$0xff]  ;;  %v3782_v38 = vld [vmem:[#allocation129_spill] sm:$0xff] }
 0x35e   : > { %v3766_v61 = vmov %v3755_v40  ;;  %v3768_v39 = vstv %s3760_s0  ;;  %v732_v17 = vadd.f32 %v730_v14, %v726_v44  ;;  %v818_v22 = vadd.f32 %v816_v48, %v812_v0 }
 0x35f   : > { %v828_v35 = vmul.f32 %v3766_v61, %v2904_v43  ;;  %v998_v52 = vmul.f32 %v3768_v39, %v3767_v18  ;;  %v994_v11 = vadd.f32 %v2865_v27, %v988_v51  ;;  %v3770_v29 = vstv %s2300_s29  ;;  %s3796_s29 = sld [smem:[#allocation112_spill]] }
 0x360   : > { %v1004_v16 = vmul.f32 %v3770_v29, %v2873_v41  ;;  %v3771_v50 = vstv %s3526_s8  ;;  %v3772_v36 = vstv %s3762_s17  ;;  %v733_v56 = vadd.f32 %v731_v28, %v727_v57  ;;  %734 = vrot.lane.b32.xlu0 %v732_v17, %s1718_s10  ;;  %s1719_s8 = smov 16   ;;  %s3840_s17 = sld [smem:[#allocation144_spill]] }
 0x361   : > { %v1096_v40 = vmul.f32 %v3771_v50, %v2807_v20  ;;  %v1198_v19 = vmul.f32 %v3772_v36, %v2803_v6  ;;  %v983_v60 = vadd.f32 %v3773_v23, %v2824_v37  ;;  %v829_v14 = vadd.f32 %v827_v42, %v823_v31 }
 0x362   : > { %v824_v27 = vadd.f32 %v822_v54, %v818_v22  ;;  %v3775_v7 = vmov %v3761_v45  ;;  %v1000_v21 = vadd.f32 %v998_v52, %v994_v11  ;;  %v3776_v8 = vmov %v3772_v36  ;;  %736 = vrot.lane.b32.xlu1 %v733_v56, %s1718_s10  ;;  %s1278_s10 = scalar_lea.sflag [#allocation4], %s3835_s27 }
 0x363   : > { %v834_v1 = vmul.f32 %v3775_v7, %v2908_v5  ;;  %v1199_v2 = vmul.f32 %v3776_v8, %v2807_v20  ;;  %v3777_v28 = vstv %s3769_s18  ;;  %v3778_v37 = vstv %s3535_s6  ;;  %s3084_s6 = sld [smem:[#allocation6 + $0x99]] }
 0x364   : > { %v1010_v53 = vmul.f32 %v3777_v28, %v2817_v30  ;;  %v1016_v48 = vmul.f32 %v3778_v37, %v2877_v9  ;;  %v989_v13 = vadd.f32 %v3779_v63, %v983_v60  ;;  %v835_v42 = vadd.f32 %v833_v32, %v829_v14 }
 0x365   : > { %v830_v55 = vadd.f32 %v828_v35, %v824_v27  ;;  %v1006_v10 = vadd.f32 %v1004_v16, %v1000_v21  ;;  %v1085_v45 = vadd.f32 %v3780_v49, %v2827_v4  ;;  %v3781_v44 = vstv %s3774_s7  ;;  %v3788_v35 = vld [vmem:[#allocation95_spill] sm:$0xff]  ;;  %v3797_v21 = vld [vmem:[#allocation97_spill] sm:$0xff] }
 0x366   : > { %v1022_v33 = vmul.f32 %v3781_v44, %v2894_v15  ;;  %v995_v0 = vadd.f32 %v2886_v47, %v989_v13  ;;  %v3783_v54 = vmov %v3768_v39  ;;  %v3785_v51 = vmov %v3770_v29  ;;  %837 = vrot.lane.b32.xlu0 %v835_v42, %s1719_s8  ;;  %v3792_v29 = vld [vmem:[#allocation96_spill] sm:$0xff]  ;;  %s3841_s7 = smov %s3840_s17  ;;  %s3192_s18 = scalar_lea.hbm %s3840_s17, %s1493_s13 }
 0x367   : > { %v999_v59 = vmul.f32 %v3783_v54, %v3782_v38  ;;  %v1005_v57 = vmul.f32 %v3785_v51, %v2890_v62  ;;  %v836_v32 = vadd.f32 %v834_v1, %v830_v55  ;;  %v1012_v31 = vadd.f32 %v1010_v53, %v1006_v10  ;;  %v3805_v51 = vld [vmem:[#allocation102_spill] sm:$0xff] }
 0x368   : > { %v3787_v4 = vmov %v3777_v28  ;;  %v1091_v39 = vadd.f32 %v3788_v35, %v1085_v45  ;;  %v3790_v52 = vmov %v3778_v37  ;;  %v3791_v22 = vmov %v3781_v44  ;;  %v3802_v45 = vld [vmem:[#allocation101_spill] sm:$0xff] }
 0x369   : > { %v1011_v61 = vmul.f32 %v3787_v4, %v2821_v12  ;;  %v1001_v47 = vadd.f32 %v999_v59, %v995_v0  ;;  %v1017_v17 = vmul.f32 %v3790_v52, %v2904_v43  ;;  %v1023_v11 = vmul.f32 %v3791_v22, %v2908_v5  ;;  %839 = vrot.lane.b32.xlu1 %v836_v32, %s1719_s8  ;;  %v3810_v22 = vld [vmem:[#allocation103_spill] sm:$0xff]  ;;  %s1723_s8 = smov [#allocation7]  }
 0x36a   : > { %v1086_v16 = vadd.f32 %v3792_v29, %v2830_v24  ;;  %v1018_v50 = vadd.f32 %v1016_v48, %v1012_v31  ;;  %v1097_v36 = vadd.f32 %v2900_v3, %v1091_v39  ;;  %v3793_v56 = vstv %s3784_s4  ;;  %v3798_v24 = vld [vmem:[#allocation100_spill] sm:$0xff]  ;;  %s1633_s4 = scalar_lea.vmem %s3194_s2, 128 }
 0x36b   : > { %v1101_v23 = vmul.f32 %v3793_v56, %v3767_v18  ;;  %v3794_v60 = vstv %s2321_s26  ;;  %v1007_v27 = vadd.f32 %v1005_v57, %v1001_v47  ;;  %v3795_v7 = vstv %s3786_s30  ;;  %s3089_s26 = sld [smem:[#allocation6 + $0x1a]]  ;;  %p1634_p9 = scmp.ne.s32.totalorder %s3194_s2, %s1633_s4 }
 0x36c   : > { %v1107_v14 = vmul.f32 %v3794_v60, %v2873_v41  ;;  %v1113_v1 = vmul.f32 %v3795_v7, %v2817_v30  ;;  %v1092_v8 = vadd.f32 %v3797_v21, %v1086_v16  ;;  %v1188_v28 = vadd.f32 %v3798_v24, %v2833_v26  ;;  %s1637_s30 = sshll.u32 %s1723_s8, 4  ;;  %s1638_s30 = int_to_ptr.vmem [resolvable:$false] %s1637_s30 }
 0x36d   : > { %v1024_v53 = vadd.f32 %v1022_v33, %v1018_v50  ;;  %v1103_v37 = vadd.f32 %v1101_v23, %v1097_v36  ;;  %v3799_v3 = vstv %s3789_s25  ;;  %v3800_v63 = vmov %v3793_v56  ;;  %p1635_p13 = pnand %p1634_p9, %p3842_p11  ;;  %s1639_s25 = scalar_lea.vmem %s1638_s30, 256 }
 0x36e   : > { %v1119_v48 = vmul.f32 %v3799_v3, %v2877_v9  ;;  %v1102_v13 = vmul.f32 %v3800_v63, %v3782_v38  ;;  %v1013_v42 = vadd.f32 %v1011_v61, %v1007_v27  ;;  %v1098_v55 = vadd.f32 %v1096_v40, %v1092_v8  ;;  %v3822_v63 = vld [vmem:[#allocation24_spill] sm:$0xff]  ;;  %p1640_p0 = scmp.lt.s32.totalorder %s3194_s2, %s1638_s30  ;;  %p1641_p3 = scmp.lt.s32.totalorder %s1639_s25, %s1633_s4 }
 0x36f   : > { %v3801_v10 = vmov %v3794_v60  ;;  %v1194_v44 = vadd.f32 %v3802_v45, %v1188_v28  ;;  %1026 = vrot.lane.b32.xlu0 %v1024_v53, %s1720_s28  ;;  %v1109_v26 = vadd.f32 %v1107_v14, %v1103_v37  ;;  %v3803_v33 = vstv %s2331_s3  ;;  %s3113_s3 = sld [smem:[#allocation6 + $0x9a]]  ;;  %v3820_v37 = vld [vmem:[#allocation25_spill] sm:$0xff]  ;;  %p1636_p7 = pneg %p1635_p13 }
 0x370   : > { %v1108_v49 = vmul.f32 %v3801_v10, %v2890_v62  ;;  %v1125_v0 = vmul.f32 %v3803_v33, %v2894_v15  ;;  %v3804_v54 = vstv %s3796_s29  ;;  %v1189_v40 = vadd.f32 %v3805_v51, %v2836_v34  ;;  %p1642_p12 = por %p1641_p3, %p1640_p0 }
 0x371   : > { %v1204_v59 = vmul.f32 %v3804_v54, %v3767_v18  ;;  %v1019_v57 = vadd.f32 %v1017_v17, %v1013_v42  ;;  %v1104_v32 = vadd.f32 %v1102_v13, %v1098_v55  ;;  %v1200_v31 = vadd.f32 %v1198_v19, %v1194_v44 }
 0x372   : > { %v3806_v4 = vstv %s2341_s24  ;;  %v1115_v35 = vadd.f32 %v1113_v1, %v1109_v26  ;;  %v3807_v39 = vmov %v3795_v7  ;;  %v3809_v34 = vmov %v3799_v3  ;;  %s3129_s24 = sld [smem:[#allocation6 + $0x9b]]  ;;  %p1643_p5 = pnand %p1642_p12, %p1636_p7 }
 0x373   : > { %v1210_v61 = vmul.f32 %v3806_v4, %v2873_v41  ;;  %v1114_v47 = vmul.f32 %v3807_v39, %v2821_v12  ;;  %v1120_v52 = vmul.f32 %v3809_v34, %v2904_v43  ;;  %v1195_v29 = vadd.f32 %v3810_v22, %v1189_v40 }
 0x374   : > { %v1025_v17 = vadd.f32 %v1023_v11, %v1019_v57  ;;  %v1110_v16 = vadd.f32 %v1108_v49, %v1104_v32  ;;  %v3811_v19 = vmov %v3803_v33  ;;  %v1206_v36 = vadd.f32 %v1204_v59, %v1200_v31 }
 0x375   : > { %v1126_v50 = vmul.f32 %v3811_v19, %v2908_v5  ;;  %v1121_v56 = vadd.f32 %v1119_v48, %v1115_v35  ;;  %v1201_v23 = vadd.f32 %v1199_v2, %v1195_v29  ;;  %v3815_v60 = vmov %v3804_v54 }
 0x376   : > { %v1205_v14 = vmul.f32 %v3815_v60, %v3782_v38  ;;  %v3816_v27 = vmov %v3806_v4  ;;  %1028 = vrot.lane.b32.xlu1 %v1025_v17, %s1720_s28  ;;  %v1116_v1 = vadd.f32 %v1114_v47, %v1110_v16  ;;  %v1212_v11 = vadd.f32 %v1210_v61, %v1206_v36 }
 0x377   : > { %v1211_v7 = vmul.f32 %v3816_v27, %v2890_v62  ;;  %v3818_v21 = vstv %s2343_s12  ;;  %v3819_v24 = vstv %s3808_s23  ;;  %v1127_v2 = vadd.f32 %v1125_v0, %v1121_v56  ;;  %s1722_s12 = smov 80  }
 0x378   : > { %v1216_v8 = vmul.f32 %v3818_v21, %v2817_v30  ;;  %v1222_v28 = vmul.f32 %v3819_v24, %v2877_v9  ;;  %v1207_v53 = vadd.f32 %v1205_v14, %v1201_v23  ;;  %v3821_v3 = vstv %s3812_s1 }
 0x379   : > { %v901_v48 = vmul.f32 %v3821_v3, %v3820_v37  ;;  %v3823_v13 = vstv %s3813_s14  ;;  %v3824_v55 = vstv %s3814_s20  ;;  %v1122_v49 = vadd.f32 %v1120_v52, %v1116_v1  ;;  %1129 = vrot.lane.b32.xlu0 %v1127_v2, %s1721_s11 }
 0x37a   : > { %v894_v42 = vmul.f32 %v3823_v13, %v3822_v63  ;;  %v907_v10 = vmul.f32 %v3824_v55, %v2807_v20  ;;  %v1218_v45 = vadd.f32 %v1216_v8, %v1212_v11  ;;  %v3825_v44 = vstv %s3817_s15  ;;  %v3828_v20 = vld [vmem:[#allocation106_spill] sm:$0xff] }
 0x37b   : > { %v1228_v26 = vmul.f32 %v3825_v44, %v2894_v15  ;;  %v1213_v33 = vadd.f32 %v1211_v7, %v1207_v53  ;;  %v3826_v0 = vmov %v3818_v21  ;;  %v3827_v59 = vmov %v3819_v24 }
 0x37c   : > { %v1217_v54 = vmul.f32 %v3826_v0, %v2821_v12  ;;  %v1223_v51 = vmul.f32 %v3827_v59, %v2904_v43  ;;  %v897_v40 = vadd.f32 %v3828_v20, %v2775_v46  ;;  %v911_v57 = vstv %s3084_s6  ;;  %v3831_v46 = vld [vmem:[#allocation23_spill] sm:$0xff] }
 0x37d   : > { %v1128_v32 = vadd.f32 %v1126_v50, %v1122_v49  ;;  %v1224_v31 = vadd.f32 %v1222_v28, %v1218_v45  ;;  %v917_v4 = vstv %s3089_s26  ;;  %v3829_v35 = vmov %v3825_v44 }
 0x37e   : > { %v1219_v61 = vadd.f32 %v1217_v54, %v1213_v33  ;;  %v1229_v39 = vmul.f32 %v3829_v35, %v2908_v5  ;;  %v903_v47 = vadd.f32 %v901_v48, %v897_v40  ;;  %v3830_v34 = vmov %v3824_v55 }
 0x37f   : > { %v906_v52 = vmul.f32 %v3830_v34, %v2803_v6  ;;  %1131 = vrot.lane.b32.xlu1 %v1128_v32, %s1721_s11  ;;  %v1230_v22 = vadd.f32 %v1228_v26, %v1224_v31  ;;  %v896_v29 = vadd.f32 %v894_v42, %v2772_v25  ;;  %v3832_v17 = vmov %v3821_v3  ;;  %v3833_v31 = vld [vmem:[#allocation45_spill] sm:$0xff] }
 0x380   : > { %v900_v16 = vmul.f32 %v3832_v17, %v3831_v46  ;;  %v913_v19 = vmul.f32 %v911_v57, %v3782_v38  ;;  %v1225_v50 = vadd.f32 %v1223_v51, %v1219_v61  ;;  %v909_v36 = vadd.f32 %v907_v10, %v903_v47 }
 0x381   : > { %v919_v56 = vmul.f32 %v917_v4, %v2890_v62  ;;  %1232 = vrot.lane.b32.xlu0 %v1230_v22, %s1722_s12  ;;  %v923_v23 = vstv %s3113_s3  ;;  %v929_v60 = vstv %s3115_s21  ;;  %v912_v7 = vmul.f32 %v911_v57, %v3767_v18 }
 0x382   : > { %v902_v14 = vadd.f32 %v900_v16, %v896_v29  ;;  %v1231_v6 = vadd.f32 %v1229_v39, %v1225_v50  ;;  %v915_v27 = vadd.f32 %v913_v19, %v909_v36  ;;  %v935_v1 = vstv %s3129_s24 }
 0x383   : > { %v918_v11 = vmul.f32 %v917_v4, %v2873_v41  ;;  %v925_v38 = vmul.f32 %v923_v23, %v2821_v12  ;;  %v931_v8 = vmul.f32 %v929_v60, %v2904_v43  ;;  %v937_v28 = vmul.f32 %v935_v1, %v2908_v5 }
 0x384   : > { %v908_v25 = vadd.f32 %v906_v52, %v902_v14  ;;  %1234 = vrot.lane.b32.xlu1 %v1231_v6, %s1722_s12  ;;  %v921_v21 = vadd.f32 %v919_v56, %v915_v27  ;;  %v924_v53 = vmul.f32 %v923_v23, %v2817_v30  ;;  %v930_v37 = vmul.f32 %v929_v60, %v2877_v9 }
 0x385   : > { %v936_v48 = vmul.f32 %v935_v1, %v2894_v15  ;;  %v741_v10 = vadd.s32 4294967264, %v2009_v58  ;;  %vm738_vm5 = vcmp.lt.s32.totalorder %v2009_v58, 32  ;;  %v638_v5 = vadd.s32 4294967248, %v2009_v58 }
 0x386   : > { %v914_v62 = vadd.f32 %v912_v7, %v908_v25  ;;  %v927_v24 = vadd.f32 %v925_v38, %v921_v21  ;;  %v844_v30 = vadd.s32 4294967280, %v2009_v58  ;;  %vm635_vm6 = vcmp.lt.s32.totalorder %v2009_v58, 48 }
 0x387   : > { %vm841_vm7 = vcmp.lt.s32.totalorder %v2009_v58, 16  ;;  %vm743_vm8 = vcmp.ge.s32.totalorder %v741_v10, 0  ;;  %vm640_vm9 = vcmp.ge.s32.totalorder %v638_v5, 0  ;;  %v1034_v4 = vadd.s32 16, %v3833_v31 }
 0x388   : > { %v920_v2 = vadd.f32 %v918_v11, %v914_v62  ;;  %v933_v18 = vadd.f32 %v931_v8, %v927_v24  ;;  %vm846_vm10 = vcmp.ge.s32.totalorder %v844_v30, 0  ;;  %vm1030_vm11 = vcmp.lt.s32.totalorder %v2009_v58, 112 }
 0x389   : > { %v1137_v39 = vadd.s32 32, %v3833_v31  ;;  %vm1038_vm12 = vcmp.lt.s32.totalorder %v1034_v4, 256  ;;  %vm1133_vm13 = vcmp.lt.s32.totalorder %v2009_v58, 96  ;;  %v1240_v17 = vadd.s32 48, %v3833_v31 }
 0x38a   : > { %v926_v3 = vadd.f32 %v924_v53, %v920_v2  ;;  %v939_v41 = vadd.f32 %v937_v28, %v933_v18  ;;  %vm1236_vm15 = vcmp.lt.s32.totalorder %v2009_v58, 80  ;;  %v3836_v2 = vld [vmem:[#allocation21_spill] sm:$0xff] }
 0x38b   : > { %vm1141_vm14 = vcmp.lt.s32.totalorder %v1137_v39, 256  ;;  %vm1244_vm0 = vcmp.lt.s32.totalorder %v1240_v17, 256  ;;  %v1265_v53 = vsub.s32 0, %v3836_v2 }
 0x38c   : > { %v932_v63 = vadd.f32 %v930_v37, %v926_v3 }
 0x38e   : > { %v938_v13 = vadd.f32 %v936_v48, %v932_v63  ;;  %v3839_v63 = vld [vmem:[#allocation22_spill] sm:$0xff] }
 0x3cd   : > { %v632_v42 = vpop.permute.xlu0 %631 }
 0x3ce   : > { %v634_v12 = vpop.permute.xlu1 %633 }
 0x3cf   : > { %v637_v45 = vsel %vm635_vm6, %v634_v12, %v632_v42  ;;  %v636_v20 = vsel %vm635_vm6, %v632_v42, %v634_v12 }
 0x3d0   : > { %v646_v33 = vsel %vm640_vm9, %v637_v45, 0.0 }
 0x3d2   : > { %v735_v55 = vpop.permute.xlu0 %734 }
 0x3d4   : > { %v737_v43 = vpop.permute.xlu1 %736 }
 0x3d5   : > { %v740_v15 = vsel %vm738_vm5, %v737_v43, %v735_v55  ;;  %v739_v54 = vsel %vm738_vm5, %v735_v55, %v737_v43 }
 0x3d6   : > { %v749_v26 = vsel %vm743_vm8, %v740_v15, 0.0  ;;  %v752_v32 = vadd.f32 %v739_v54, %v636_v20 }
 0x3d7   : > { %v751_v59 = vadd.f32 %v749_v26, %v646_v33 }
 0x3d8   : > { %v838_v9 = vpop.permute.xlu0 %837 }
 0x3db   : > { %v840_v49 = vpop.permute.xlu1 %839 }
 0x3dc   : > { %v843_v44 = vsel %vm841_vm7, %v840_v49, %v838_v9  ;;  %v842_v40 = vsel %vm841_vm7, %v838_v9, %v840_v49 }
 0x3dd   : > { %v852_v0 = vsel %vm846_vm10, %v843_v44, 0.0  ;;  %v855_v35 = vadd.f32 %v842_v40, %v752_v32 }
 0x3de   : > { %v854_v57 = vadd.f32 %v852_v0, %v751_v59 }
 0x3df   : > { %v941_v29 = vadd.f32 %v939_v41, %v855_v35 }
 0x3e0   : > { %v940_v47 = vadd.f32 %v938_v13, %v854_v57 }
 0x3e1   : > { %v1027_v51 = vpop.permute.xlu0 %1026 }
 0x3e8   : > { %v1029_v61 = vpop.permute.xlu1 %1028 }
 0x3e9   : > { %v1031_v52 = vsel %vm1030_vm11, %v1027_v51, %v1029_v61  ;;  %v1032_v22 = vsel %vm1030_vm11, %v1029_v61, %v1027_v51 }
 0x3ea   : > { %v1042_v16 = vsel %vm1038_vm12, %v1032_v22, 0.0  ;;  %v1043_v19 = vadd.f32 %v1031_v52, %v940_v47 }
 0x3eb   : > { %v1130_v34 = vpop.permute.xlu0 %1129  ;;  %v1044_v60 = vadd.f32 %v1042_v16, %v941_v29 }
 0x3f1   : > { %v1132_v46 = vpop.permute.xlu1 %1131 }
 0x3f2   : > { %v1135_v50 = vsel %vm1133_vm13, %v1132_v46, %v1130_v34  ;;  %v1134_v36 = vsel %vm1133_vm13, %v1130_v34, %v1132_v46 }
 0x3f3   : > { %v1145_v56 = vsel %vm1141_vm14, %v1135_v50, 0.0  ;;  %v1233_v23 = vpop.permute.xlu0 %1232  ;;  %v1146_v14 = vadd.f32 %v1134_v36, %v1043_v19 }
 0x3f4   : > { %v1147_v27 = vadd.f32 %v1145_v56, %v1044_v60 }
 0x3f6   : > { %v1235_v6 = vpop.permute.xlu1 %1234 }
 0x3f7   : > { %v1237_v7 = vsel %vm1236_vm15, %v1233_v23, %v1235_v6  ;;  %v1238_v1 = vsel %vm1236_vm15, %v1235_v6, %v1233_v23 }
 0x3f8   : > { %v1248_v25 = vsel %vm1244_vm0, %v1238_v1, 0.0  ;;  %v1249_v11 = vadd.f32 %v1237_v7, %v1146_v14 }
 0x3f9   : > { %v1250_v21 = vadd.f32 %v1248_v25, %v1147_v27 }
 0x3fa   : > { %v1485_v38 = vmul.f32 -1.442695, %v1249_v11 }
 0x3fb   : > { %v1486_v8 = vmul.f32 -1.442695, %v1250_v21 }
 0x3fc   : > { %1580 = vpow2.f32 %v1485_v38 }
 0x3fd   : > { %1582 = vpow2.f32 %v1486_v8 }
 0x406   : > { %v1581_v62 = vpop.eup %1580 }
 0x407   : > { %v1583_v24 = vpop.eup %1582  ;;  %v1257_v28 = vadd.f32 1.0, %v1581_v62 }
 0x408   : > { %v1258_v58 = vadd.f32 1.0, %v1583_v24 }
 0x409   : > { %1584 = vrcp.f32 %v1257_v28 }
 0x40a   : > { %1586 = vrcp.f32 %v1258_v58 }
 0x413   : > { %v1585_v37 = vpop.eup %1584 }
 0x414   : > { %v1587_v18 = vpop.eup %1586  ;;  %v1266_v3 = vrot.slane %v1585_v37, %v1265_v53 }
 0x415   : > { %v1270_v48 = vrot.slane %v1587_v18, %v1265_v53 }
 0x417   : > { %v1273_v41 = vcombine.low %v1266_v3, %v1270_v48 }
 0x419   : > { %v1275_v13 = vmul.f32 %v1273_v41, %v3839_v63 }
 0x41b   : > { %1276 = vst [vmem:[%s227_s9] sm:$0xff] %v1275_v13 }
 0x41c   : > { %1646 = shalt.err (!%p1643_p5)
}
 0x41d   : > { %s1647_s29 = scalar_lea.hbm %s3192_s18, 128  ;;  %s1651_s26 = scalar_lea.hbm %s3841_s7, 256 }
 0x41e   : > { %p1648_p10 = scmp.ne.s32.totalorder %s3192_s18, %s1647_s29  ;;  %p1652_p4 = scmp.lt.u32.totalorder %s3192_s18, %s3841_s7 }
 0x41f   : > { %p1653_p6 = scmp.lt.u32.totalorder %s1651_s26, %s1647_s29  ;;  %p1655_p9 = scmp.lt.u32.totalorder %s1647_s29, %s3192_s18 }
 0x420   : > { %p1649_p2 = pnand %p1648_p10, %p3842_p11 }
 0x421   : > { %p1654_p8 = por %p1653_p6, %p1652_p4 }
 0x422   : > { %p1650_p1 = pneg %p1649_p2 }
 0x423   : > { %p1656_p13 = por %p1655_p9, %p1654_p8 }
 0x425   : > { %p1657_p7 = pnand %p1656_p13, %p1650_p1 }
 0x427   : > { %1660 = shalt.err (!%p1657_p7)
}
 0x428   : > { %1507 = dma.vmem_to_hbm [thread:$0]  (%p3842_p11), %s3194_s2, 128, %s3192_s18, %s1278_s10  }
 0x429 PF: > { %s3843_s14 = sld [smem:[#allocation11_spill]]  ;;  %s3844_s20 = sld [smem:[#allocation16_spill]] }
 0x42a   : > { %s3845_s15 = sld [smem:[#allocation14_spill]] }
 0x42f   : > { %s1304_s3 = sand.u32 1, %s3843_s14   ;;  %p3846_p0 = scmp.ne.s32.totalorder %s3844_s20, 0 }
 0x430   : > { %p3847_p3 = scmp.ge.s32.totalorder %s3845_s15, 2  ;;  %s1305_s21 = scalar_lea.sflag [#allocation4], %s1304_s3 }
 0x432   : > { %p1518_p12 = pnand %p3847_p3, %p3846_p0 }
 0x434   : > { %1686 = dma.done.wait (!%p1518_p12), %s1305_s21, 128  }
 0x435   : > { %1688 = vsyncadd (!%p1518_p12), %s1305_s21, 4294967168  ;;  %s3848_s18 = sld [smem:[#allocation17_spill]]  ;;  %s3849_s15 = sld [smem:[#allocation12_spill]] }
 0x436   : > { %s3850_s16 = sld [smem:[#allocation13_spill]]  ;;  %s3851_s17 = sld [smem:[#allocation18_spill]] }
 0x43b   : > { %p18_p5 = scmp.ge.s32.totalorder %s3848_s18, 4  }
 0x43d   :  { %20 = sbr.rel (!%p18_p5) target bundleno = 12 (0xc), region = 86 }
 0x444   :  { %1310 = vsyncpa [#allocation3], 1 }
 0x445   :  { %1312 = vsyncpa [#allocation3 + $0x1], 1 }
 0x446   :  { %1313 = vsyncpa [#allocation4], 1 }
 0x447   :  { %1315 = vsyncpa [#allocation4 + $0x1], 1 }
 0x448   :  { %1316 = vsyncpa [#allocation5], 1 }
 0x449   :  { %1318 = vsyncpa [#allocation5 + $0x1], 1 }

</bundles_post_ra>
